<compile_context>
chip_gen: v5e
topology: v5e:2x2
jax: 0.10.0
libtpu: 0.0.40
codegen_flags: <defaults>
</compile_context>

<pallas_src>
import jax
import jax.numpy as jnp
from jax.experimental import pallas as pl
from jax.experimental.pallas import tpu as pltpu


def _round_up(x, m):
    return ((x + m - 1) // m) * m


def _make_kernel(TB, S):
    """Builds the kernel for a batch tile of TB examples, S tokens each."""

    def kernel(ids_ref, table_hbm, w_ref, b_ref, o_ref, gbuf, sem, acc_ref):
        # ids_ref:   SMEM [Bp*S] int32   (flattened token ids, scalar prefetch)
        # table_hbm: HBM  [V, Dp]        (embedding table, stream dtype)
        # w_ref:     VMEM [Dp, Cp] f32   b_ref: VMEM [1, Cp] f32
        # o_ref:     VMEM [TB, Cp] f32
        # gbuf:      VMEM [2, TB, Dp]    double-buffered gather buffer
        # sem:       DMA semaphores [2]  (one per slot, shared by TB copies)
        # acc_ref:   VMEM [TB, Dp] f32   running max accumulator
        bt = pl.program_id(0)
        base = bt * (TB * S)

        def fetch(t, slot):
            # Gather the token-position-t embedding row of every example in
            # this batch tile into gbuf[slot].
            for e in range(TB):
                tok = ids_ref[base + e * S + t]
                pltpu.make_async_copy(
                    table_hbm.at[tok], gbuf.at[slot, e], sem.at[slot]).start()

        def wait_slot(slot):
            # One wait per issued copy; only shapes matter for the amount
            # (same pattern as the paged-attention reference kernel).
            for e in range(TB):
                pltpu.make_async_copy(
                    table_hbm.at[0], gbuf.at[slot, e], sem.at[slot]).wait()

        acc_ref[...] = jnp.full(acc_ref.shape, -jnp.inf, jnp.float32)
        fetch(0, 0)

        @pl.loop(0, S)
        def _(t):
            slot = t & 1
            wait_slot(slot)

            @pl.when(t + 1 < S)
            def _():
                fetch(t + 1, slot ^ 1)

            # Pure elementwise VPU running max; overlaps with the next wave
            # of row DMAs gathering into the other slot.
            acc_ref[...] = jnp.maximum(acc_ref[...],
                                       gbuf[slot].astype(jnp.float32))

        logits = jnp.dot(acc_ref[...], w_ref[...],
                         preferred_element_type=jnp.float32) + b_ref[...]
        o_ref[...] = jax.nn.sigmoid(logits).astype(o_ref.dtype)

    return kernel


def fasttext_forward(token_ids, embedding_table, fc_weight, fc_bias, *,
                     max_tb=64, stream_dtype=None):
    """token_ids: [B, S] int; embedding_table: [V, D];
    fc_weight: [C, D] (PyTorch nn.Linear layout); fc_bias: [C]."""
    B, S = token_ids.shape
    V, D = embedding_table.shape
    C = fc_weight.shape[0]
    if stream_dtype is None:
        stream_dtype = embedding_table.dtype

    Dp = _round_up(D, 128)          # lane-aligned embed dim
    Cp = _round_up(C, 128)          # lane-dense output (unmasked vst)

    # Batch tile: multiple of 8 sublanes; ensure batches >= 16 yield at least
    # two tiles so both v7x TensorCores get work on the "parallel" axis.
    TB = min(max_tb, _round_up(B, 8))
    if B >= 16 and _round_up(B, TB) // TB < 2:
        TB = max(8, _round_up(_round_up(B, 8) // 2, 8))
    Bp = _round_up(B, TB)

    # One-time parameter prep (small compared with the streamed activations).
    table = embedding_table.astype(stream_dtype)
    if Dp != D:
        table = jnp.pad(table, ((0, 0), (0, Dp - D)))
    w_t = fc_weight.T.astype(jnp.float32)
    if (Dp, Cp) != (D, C):
        w_t = jnp.pad(w_t, ((0, Dp - D), (0, Cp - C)))
    b2d = fc_bias.reshape(1, C).astype(jnp.float32)
    if Cp != C:
        b2d = jnp.pad(b2d, ((0, 0), (0, Cp - C)))

    ids = token_ids.astype(jnp.int32)
    if Bp != B:
        ids = jnp.pad(ids, ((0, Bp - B), (0, 0)))   # padded rows gather row 0
    ids_flat = ids.reshape(Bp * S)                  # flat -> minimal SMEM pad

    grid = (Bp // TB,)
    emb_bytes = jnp.dtype(stream_dtype).itemsize

    out = pl.pallas_call(
        _make_kernel(TB, S),
        out_shape=jax.ShapeDtypeStruct((Bp, Cp), jnp.float32),
        grid_spec=pltpu.PrefetchScalarGridSpec(
            num_scalar_prefetch=1,          # token ids -> SMEM
            grid=grid,
            in_specs=[
                pl.BlockSpec(memory_space=pl.ANY),               # table (HBM)
                pl.BlockSpec((Dp, Cp), lambda i, ids: (0, 0)),   # W^T
                pl.BlockSpec((1, Cp), lambda i, ids: (0, 0)),    # bias
            ],
            out_specs=pl.BlockSpec((TB, Cp), lambda i, ids: (i, 0)),
            scratch_shapes=[
                pltpu.VMEM((2, TB, Dp), stream_dtype),           # gather buf
                pltpu.SemaphoreType.DMA((2,)),                   # per slot
                pltpu.VMEM((TB, Dp), jnp.float32),               # running max
            ],
        ),
        compiler_params=pltpu.CompilerParams(
            dimension_semantics=("parallel",)),
        cost_estimate=pl.CostEstimate(
            flops=2 * Bp * Dp * Cp,
            transcendentals=Bp * Cp,
            bytes_accessed=(Bp * S * Dp * emb_bytes      # gathered rows
                            + Dp * Cp * 4 + Cp * 4       # weights + bias
                            + Bp * Cp * 4                # output
                            + Bp * S * 4),               # token ids
        ),
    )(ids_flat, table, w_t, b2d)

    return out[:B, :C]


def fasttext_reference(token_ids, embedding_table, fc_weight, fc_bias):
    emb = jnp.take(embedding_table, token_ids, axis=0)          # [B, S, D]
    pooled = jnp.max(emb, axis=1).astype(jnp.float32)           # [B, D]
    logits = jnp.dot(pooled, fc_weight.T, precision="highest") + fc_bias
    return jax.nn.sigmoid(logits)


if __name__ == "__main__":
    # Small, deterministic configuration.
    vocab_size = 100
    n_class = 8
    embed_dim = 128
    batch = 4
    seq_len = 16

    key = jax.random.PRNGKey(0)
    k_emb, k_w, k_b, k_x = jax.random.split(key, 4)

    embedding_table = jax.random.normal(k_emb, (vocab_size, embed_dim),
                                        dtype=jnp.float32)
    fc_weight = jax.random.normal(k_w, (n_class, embed_dim),
                                  dtype=jnp.float32) * 0.05
    fc_bias = jax.random.normal(k_b, (n_class,), dtype=jnp.float32) * 0.05

    token_ids = jax.random.randint(k_x, (batch, seq_len), 0, vocab_size,
                                   dtype=jnp.int32)

    out = fasttext_forward(token_ids, embedding_table, fc_weight, fc_bias)
    out = jax.block_until_ready(out)

    ref = fasttext_reference(token_ids, embedding_table, fc_weight, fc_bias)
    assert out.shape == (batch, n_class)
    assert jnp.allclose(out, ref, atol=2e-3, rtol=2e-3), \
        float(jnp.max(jnp.abs(out - ref)))

    print("KERNEL_OK")
</pallas_src>

<mosaic_0001>
module attributes {stable_mosaic.version = 11 : i64} {
  func.func @kernel(%arg0: i32, %arg1: memref<128xi32, #tpu.memory_space<smem>>, %arg2: memref<100x128xf32, #tpu.memory_space<any>>, %arg3: memref<128x128xf32, #tpu.memory_space<vmem>>, %arg4: memref<1x128xf32, #tpu.memory_space<vmem>>, %arg5: memref<8x128xf32, #tpu.memory_space<vmem>>, %arg6: memref<2x8x128xf32, #tpu.memory_space<vmem>>, %arg7: memref<2x!tpu.dma_semaphore, #tpu.memory_space<semaphore_mem>>, %arg8: memref<8x128xf32, #tpu.memory_space<vmem>>) attributes {dimension_semantics = [#tpu.dimension_semantics<parallel>], iteration_bounds = array<i64: 1>, scalar_prefetch = 1 : i64, scratch_operands = 3 : i64, tpu.core_type = #tpu.core_type<tc>, window_params = [{}, {pipeline_mode = #tpu.pipeline_mode<synchronous>, transform_indices = @transform_1, window_bounds = array<i64: 128, 128>}, {pipeline_mode = #tpu.pipeline_mode<synchronous>, transform_indices = @transform_2, window_bounds = array<i64: 1, 128>}, {transform_indices = @transform_3, window_bounds = array<i64: 8, 128>}]} {
    %c128_i32 = arith.constant 128 : i32
    %0 = arith.muli %arg0, %c128_i32 : i32
    %cst = arith.constant 0xFF800000 : f32
    %1 = vector.broadcast %cst : f32 to vector<8x128xf32>
    %c0 = arith.constant 0 : index
    %c0_0 = arith.constant 0 : index
    %2 = vector.load %arg8[%c0, %c0_0] : memref<8x128xf32, #tpu.memory_space<vmem>>, vector<8x128xf32>
    tpu.vector_store %arg8[%c0, %c0_0], %1 {strides = array<i32>} : memref<8x128xf32, #tpu.memory_space<vmem>>, vector<8x128xf32>,
    %c0_i32 = arith.constant 0 : i32
    %3 = arith.addi %0, %c0_i32 : i32
    %c0_i32_1 = arith.constant 0 : i32
    %4 = arith.addi %3, %c0_i32_1 : i32
    %5 = arith.index_cast %4 : i32 to index
    %6 = memref.load %arg1[%5] : memref<128xi32, #tpu.memory_space<smem>>
    %c0_i32_2 = arith.constant 0 : i32
    %c0_i32_3 = arith.constant 0 : i32
    %c0_i32_4 = arith.constant 0 : i32
    %c0_i32_5 = arith.constant 0 : i32
    %7 = tpu.memref_slice %arg2[%6, %c0_i32_5] : memref<100x128xf32, #tpu.memory_space<any>> -> memref<1x128xf32, #tpu.memory_space<any>>
    %8 = tpu.memref_squeeze %7 : memref<1x128xf32, #tpu.memory_space<any>> -> memref<128xf32, #tpu.memory_space<any>>
    %c0_i32_6 = arith.constant 0 : i32
    %9 = tpu.memref_slice %arg6[%c0_i32_2, %c0_i32_3, %c0_i32_6] : memref<2x8x128xf32, #tpu.memory_space<vmem>> -> memref<1x1x128xf32, #tpu.memory_space<vmem>>
    %10 = tpu.memref_squeeze %9 : memref<1x1x128xf32, #tpu.memory_space<vmem>> -> memref<128xf32, #tpu.memory_space<vmem>>
    %11 = tpu.memref_slice %arg7[%c0_i32_4] : memref<2x!tpu.dma_semaphore, #tpu.memory_space<semaphore_mem>> -> memref<1x!tpu.dma_semaphore, #tpu.memory_space<semaphore_mem>>
    %12 = tpu.memref_squeeze %11 : memref<1x!tpu.dma_semaphore, #tpu.memory_space<semaphore_mem>> -> memref<!tpu.dma_semaphore, #tpu.memory_space<semaphore_mem>>
    tpu.enqueue_dma source(%8 : memref<128xf32, #tpu.memory_space<any>>) target(%10 : memref<128xf32, #tpu.memory_space<vmem>>) target_semaphore(%12 : memref<!tpu.dma_semaphore, #tpu.memory_space<semaphore_mem>>)
    %c16_i32 = arith.constant 16 : i32
    %13 = arith.addi %0, %c16_i32 : i32
    %c0_i32_7 = arith.constant 0 : i32
    %14 = arith.addi %13, %c0_i32_7 : i32
    %15 = arith.index_cast %14 : i32 to index
    %16 = memref.load %arg1[%15] : memref<128xi32, #tpu.memory_space<smem>>
    %c0_i32_8 = arith.constant 0 : i32
    %c1_i32 = arith.constant 1 : i32
    %c0_i32_9 = arith.constant 0 : i32
    %c0_i32_10 = arith.constant 0 : i32
    %17 = tpu.memref_slice %arg2[%16, %c0_i32_10] : memref<100x128xf32, #tpu.memory_space<any>> -> memref<1x128xf32, #tpu.memory_space<any>>
    %18 = tpu.memref_squeeze %17 : memref<1x128xf32, #tpu.memory_space<any>> -> memref<128xf32, #tpu.memory_space<any>>
    %c0_i32_11 = arith.constant 0 : i32
    %19 = tpu.memref_slice %arg6[%c0_i32_8, %c1_i32, %c0_i32_11] : memref<2x8x128xf32, #tpu.memory_space<vmem>> -> memref<1x1x128xf32, #tpu.memory_space<vmem>>
    %20 = tpu.memref_squeeze %19 : memref<1x1x128xf32, #tpu.memory_space<vmem>> -> memref<128xf32, #tpu.memory_space<vmem>>
    %21 = tpu.memref_slice %arg7[%c0_i32_9] : memref<2x!tpu.dma_semaphore, #tpu.memory_space<semaphore_mem>> -> memref<1x!tpu.dma_semaphore, #tpu.memory_space<semaphore_mem>>
    %22 = tpu.memref_squeeze %21 : memref<1x!tpu.dma_semaphore, #tpu.memory_space<semaphore_mem>> -> memref<!tpu.dma_semaphore, #tpu.memory_space<semaphore_mem>>
    tpu.enqueue_dma source(%18 : memref<128xf32, #tpu.memory_space<any>>) target(%20 : memref<128xf32, #tpu.memory_space<vmem>>) target_semaphore(%22 : memref<!tpu.dma_semaphore, #tpu.memory_space<semaphore_mem>>)
    %c32_i32 = arith.constant 32 : i32
    %23 = arith.addi %0, %c32_i32 : i32
    %c0_i32_12 = arith.constant 0 : i32
    %24 = arith.addi %23, %c0_i32_12 : i32
    %25 = arith.index_cast %24 : i32 to index
    %26 = memref.load %arg1[%25] : memref<128xi32, #tpu.memory_space<smem>>
    %c0_i32_13 = arith.constant 0 : i32
    %c2_i32 = arith.constant 2 : i32
    %c0_i32_14 = arith.constant 0 : i32
    %c0_i32_15 = arith.constant 0 : i32
    %27 = tpu.memref_slice %arg2[%26, %c0_i32_15] : memref<100x128xf32, #tpu.memory_space<any>> -> memref<1x128xf32, #tpu.memory_space<any>>
    %28 = tpu.memref_squeeze %27 : memref<1x128xf32, #tpu.memory_space<any>> -> memref<128xf32, #tpu.memory_space<any>>
    %c0_i32_16 = arith.constant 0 : i32
    %29 = tpu.memref_slice %arg6[%c0_i32_13, %c2_i32, %c0_i32_16] : memref<2x8x128xf32, #tpu.memory_space<vmem>> -> memref<1x1x128xf32, #tpu.memory_space<vmem>>
    %30 = tpu.memref_squeeze %29 : memref<1x1x128xf32, #tpu.memory_space<vmem>> -> memref<128xf32, #tpu.memory_space<vmem>>
    %31 = tpu.memref_slice %arg7[%c0_i32_14] : memref<2x!tpu.dma_semaphore, #tpu.memory_space<semaphore_mem>> -> memref<1x!tpu.dma_semaphore, #tpu.memory_space<semaphore_mem>>
    %32 = tpu.memref_squeeze %31 : memref<1x!tpu.dma_semaphore, #tpu.memory_space<semaphore_mem>> -> memref<!tpu.dma_semaphore, #tpu.memory_space<semaphore_mem>>
    tpu.enqueue_dma source(%28 : memref<128xf32, #tpu.memory_space<any>>) target(%30 : memref<128xf32, #tpu.memory_space<vmem>>) target_semaphore(%32 : memref<!tpu.dma_semaphore, #tpu.memory_space<semaphore_mem>>)
    %c48_i32 = arith.constant 48 : i32
    %33 = arith.addi %0, %c48_i32 : i32
    %c0_i32_17 = arith.constant 0 : i32
    %34 = arith.addi %33, %c0_i32_17 : i32
    %35 = arith.index_cast %34 : i32 to index
    %36 = memref.load %arg1[%35] : memref<128xi32, #tpu.memory_space<smem>>
    %c0_i32_18 = arith.constant 0 : i32
    %c3_i32 = arith.constant 3 : i32
    %c0_i32_19 = arith.constant 0 : i32
    %c0_i32_20 = arith.constant 0 : i32
    %37 = tpu.memref_slice %arg2[%36, %c0_i32_20] : memref<100x128xf32, #tpu.memory_space<any>> -> memref<1x128xf32, #tpu.memory_space<any>>
    %38 = tpu.memref_squeeze %37 : memref<1x128xf32, #tpu.memory_space<any>> -> memref<128xf32, #tpu.memory_space<any>>
    %c0_i32_21 = arith.constant 0 : i32
    %39 = tpu.memref_slice %arg6[%c0_i32_18, %c3_i32, %c0_i32_21] : memref<2x8x128xf32, #tpu.memory_space<vmem>> -> memref<1x1x128xf32, #tpu.memory_space<vmem>>
    %40 = tpu.memref_squeeze %39 : memref<1x1x128xf32, #tpu.memory_space<vmem>> -> memref<128xf32, #tpu.memory_space<vmem>>
    %41 = tpu.memref_slice %arg7[%c0_i32_19] : memref<2x!tpu.dma_semaphore, #tpu.memory_space<semaphore_mem>> -> memref<1x!tpu.dma_semaphore, #tpu.memory_space<semaphore_mem>>
    %42 = tpu.memref_squeeze %41 : memref<1x!tpu.dma_semaphore, #tpu.memory_space<semaphore_mem>> -> memref<!tpu.dma_semaphore, #tpu.memory_space<semaphore_mem>>
    tpu.enqueue_dma source(%38 : memref<128xf32, #tpu.memory_space<any>>) target(%40 : memref<128xf32, #tpu.memory_space<vmem>>) target_semaphore(%42 : memref<!tpu.dma_semaphore, #tpu.memory_space<semaphore_mem>>)
    %c64_i32 = arith.constant 64 : i32
    %43 = arith.addi %0, %c64_i32 : i32
    %c0_i32_22 = arith.constant 0 : i32
    %44 = arith.addi %43, %c0_i32_22 : i32
    %45 = arith.index_cast %44 : i32 to index
    %46 = memref.load %arg1[%45] : memref<128xi32, #tpu.memory_space<smem>>
    %c0_i32_23 = arith.constant 0 : i32
    %c4_i32 = arith.constant 4 : i32
    %c0_i32_24 = arith.constant 0 : i32
    %c0_i32_25 = arith.constant 0 : i32
    %47 = tpu.memref_slice %arg2[%46, %c0_i32_25] : memref<100x128xf32, #tpu.memory_space<any>> -> memref<1x128xf32, #tpu.memory_space<any>>
    %48 = tpu.memref_squeeze %47 : memref<1x128xf32, #tpu.memory_space<any>> -> memref<128xf32, #tpu.memory_space<any>>
    %c0_i32_26 = arith.constant 0 : i32
    %49 = tpu.memref_slice %arg6[%c0_i32_23, %c4_i32, %c0_i32_26] : memref<2x8x128xf32, #tpu.memory_space<vmem>> -> memref<1x1x128xf32, #tpu.memory_space<vmem>>
    %50 = tpu.memref_squeeze %49 : memref<1x1x128xf32, #tpu.memory_space<vmem>> -> memref<128xf32, #tpu.memory_space<vmem>>
    %51 = tpu.memref_slice %arg7[%c0_i32_24] : memref<2x!tpu.dma_semaphore, #tpu.memory_space<semaphore_mem>> -> memref<1x!tpu.dma_semaphore, #tpu.memory_space<semaphore_mem>>
    %52 = tpu.memref_squeeze %51 : memref<1x!tpu.dma_semaphore, #tpu.memory_space<semaphore_mem>> -> memref<!tpu.dma_semaphore, #tpu.memory_space<semaphore_mem>>
    tpu.enqueue_dma source(%48 : memref<128xf32, #tpu.memory_space<any>>) target(%50 : memref<128xf32, #tpu.memory_space<vmem>>) target_semaphore(%52 : memref<!tpu.dma_semaphore, #tpu.memory_space<semaphore_mem>>)
    %c80_i32 = arith.constant 80 : i32
    %53 = arith.addi %0, %c80_i32 : i32
    %c0_i32_27 = arith.constant 0 : i32
    %54 = arith.addi %53, %c0_i32_27 : i32
    %55 = arith.index_cast %54 : i32 to index
    %56 = memref.load %arg1[%55] : memref<128xi32, #tpu.memory_space<smem>>
    %c0_i32_28 = arith.constant 0 : i32
    %c5_i32 = arith.constant 5 : i32
    %c0_i32_29 = arith.constant 0 : i32
    %c0_i32_30 = arith.constant 0 : i32
    %57 = tpu.memref_slice %arg2[%56, %c0_i32_30] : memref<100x128xf32, #tpu.memory_space<any>> -> memref<1x128xf32, #tpu.memory_space<any>>
    %58 = tpu.memref_squeeze %57 : memref<1x128xf32, #tpu.memory_space<any>> -> memref<128xf32, #tpu.memory_space<any>>
    %c0_i32_31 = arith.constant 0 : i32
    %59 = tpu.memref_slice %arg6[%c0_i32_28, %c5_i32, %c0_i32_31] : memref<2x8x128xf32, #tpu.memory_space<vmem>> -> memref<1x1x128xf32, #tpu.memory_space<vmem>>
    %60 = tpu.memref_squeeze %59 : memref<1x1x128xf32, #tpu.memory_space<vmem>> -> memref<128xf32, #tpu.memory_space<vmem>>
    %61 = tpu.memref_slice %arg7[%c0_i32_29] : memref<2x!tpu.dma_semaphore, #tpu.memory_space<semaphore_mem>> -> memref<1x!tpu.dma_semaphore, #tpu.memory_space<semaphore_mem>>
    %62 = tpu.memref_squeeze %61 : memref<1x!tpu.dma_semaphore, #tpu.memory_space<semaphore_mem>> -> memref<!tpu.dma_semaphore, #tpu.memory_space<semaphore_mem>>
    tpu.enqueue_dma source(%58 : memref<128xf32, #tpu.memory_space<any>>) target(%60 : memref<128xf32, #tpu.memory_space<vmem>>) target_semaphore(%62 : memref<!tpu.dma_semaphore, #tpu.memory_space<semaphore_mem>>)
    %c96_i32 = arith.constant 96 : i32
    %63 = arith.addi %0, %c96_i32 : i32
    %c0_i32_32 = arith.constant 0 : i32
    %64 = arith.addi %63, %c0_i32_32 : i32
    %65 = arith.index_cast %64 : i32 to index
    %66 = memref.load %arg1[%65] : memref<128xi32, #tpu.memory_space<smem>>
    %c0_i32_33 = arith.constant 0 : i32
    %c6_i32 = arith.constant 6 : i32
    %c0_i32_34 = arith.constant 0 : i32
    %c0_i32_35 = arith.constant 0 : i32
    %67 = tpu.memref_slice %arg2[%66, %c0_i32_35] : memref<100x128xf32, #tpu.memory_space<any>> -> memref<1x128xf32, #tpu.memory_space<any>>
    %68 = tpu.memref_squeeze %67 : memref<1x128xf32, #tpu.memory_space<any>> -> memref<128xf32, #tpu.memory_space<any>>
    %c0_i32_36 = arith.constant 0 : i32
    %69 = tpu.memref_slice %arg6[%c0_i32_33, %c6_i32, %c0_i32_36] : memref<2x8x128xf32, #tpu.memory_space<vmem>> -> memref<1x1x128xf32, #tpu.memory_space<vmem>>
    %70 = tpu.memref_squeeze %69 : memref<1x1x128xf32, #tpu.memory_space<vmem>> -> memref<128xf32, #tpu.memory_space<vmem>>
    %71 = tpu.memref_slice %arg7[%c0_i32_34] : memref<2x!tpu.dma_semaphore, #tpu.memory_space<semaphore_mem>> -> memref<1x!tpu.dma_semaphore, #tpu.memory_space<semaphore_mem>>
    %72 = tpu.memref_squeeze %71 : memref<1x!tpu.dma_semaphore, #tpu.memory_space<semaphore_mem>> -> memref<!tpu.dma_semaphore, #tpu.memory_space<semaphore_mem>>
    tpu.enqueue_dma source(%68 : memref<128xf32, #tpu.memory_space<any>>) target(%70 : memref<128xf32, #tpu.memory_space<vmem>>) target_semaphore(%72 : memref<!tpu.dma_semaphore, #tpu.memory_space<semaphore_mem>>)
    %c112_i32 = arith.constant 112 : i32
    %73 = arith.addi %0, %c112_i32 : i32
    %c0_i32_37 = arith.constant 0 : i32
    %74 = arith.addi %73, %c0_i32_37 : i32
    %75 = arith.index_cast %74 : i32 to index
    %76 = memref.load %arg1[%75] : memref<128xi32, #tpu.memory_space<smem>>
    %c0_i32_38 = arith.constant 0 : i32
    %c7_i32 = arith.constant 7 : i32
    %c0_i32_39 = arith.constant 0 : i32
    %c0_i32_40 = arith.constant 0 : i32
    %77 = tpu.memref_slice %arg2[%76, %c0_i32_40] : memref<100x128xf32, #tpu.memory_space<any>> -> memref<1x128xf32, #tpu.memory_space<any>>
    %78 = tpu.memref_squeeze %77 : memref<1x128xf32, #tpu.memory_space<any>> -> memref<128xf32, #tpu.memory_space<any>>
    %c0_i32_41 = arith.constant 0 : i32
    %79 = tpu.memref_slice %arg6[%c0_i32_38, %c7_i32, %c0_i32_41] : memref<2x8x128xf32, #tpu.memory_space<vmem>> -> memref<1x1x128xf32, #tpu.memory_space<vmem>>
    %80 = tpu.memref_squeeze %79 : memref<1x1x128xf32, #tpu.memory_space<vmem>> -> memref<128xf32, #tpu.memory_space<vmem>>
    %81 = tpu.memref_slice %arg7[%c0_i32_39] : memref<2x!tpu.dma_semaphore, #tpu.memory_space<semaphore_mem>> -> memref<1x!tpu.dma_semaphore, #tpu.memory_space<semaphore_mem>>
    %82 = tpu.memref_squeeze %81 : memref<1x!tpu.dma_semaphore, #tpu.memory_space<semaphore_mem>> -> memref<!tpu.dma_semaphore, #tpu.memory_space<semaphore_mem>>
    tpu.enqueue_dma source(%78 : memref<128xf32, #tpu.memory_space<any>>) target(%80 : memref<128xf32, #tpu.memory_space<vmem>>) target_semaphore(%82 : memref<!tpu.dma_semaphore, #tpu.memory_space<semaphore_mem>>)
    %c0_i32_42 = arith.constant 0 : i32
    %c16_i32_43 = arith.constant 16 : i32
    %83 = arith.addi %c0_i32_42, %c16_i32_43 : i32
    %c1_i32_44 = arith.constant 1 : i32
    scf.for %arg9 = %c0_i32_42 to %83 step %c1_i32_44  : i32 {
      %c1_i32_56 = arith.constant 1 : i32
      %96 = arith.muli %arg9, %c1_i32_56 : i32
      %c0_i32_57 = arith.constant 0 : i32
      %97 = arith.addi %c0_i32_57, %96 : i32
      %c1_i32_58 = arith.constant 1 : i32
      %98 = arith.andi %97, %c1_i32_58 : i32
      %c0_i32_59 = arith.constant 0 : i32
      %c0_i32_60 = arith.constant 0 : i32
      %c0_i32_61 = arith.constant 0 : i32
      %99 = tpu.memref_slice %arg2[%c0_i32_59, %c0_i32_61] : memref<100x128xf32, #tpu.memory_space<any>> -> memref<1x128xf32, #tpu.memory_space<any>>
      %100 = tpu.memref_squeeze %99 : memref<1x128xf32, #tpu.memory_space<any>> -> memref<128xf32, #tpu.memory_space<any>>
      %c0_i32_62 = arith.constant 0 : i32
      %101 = tpu.memref_slice %arg6[%98, %c0_i32_60, %c0_i32_62] : memref<2x8x128xf32, #tpu.memory_space<vmem>> -> memref<1x1x128xf32, #tpu.memory_space<vmem>>
      %102 = tpu.memref_squeeze %101 : memref<1x1x128xf32, #tpu.memory_space<vmem>> -> memref<128xf32, #tpu.memory_space<vmem>>
      %103 = tpu.memref_slice %arg7[%98] : memref<2x!tpu.dma_semaphore, #tpu.memory_space<semaphore_mem>> -> memref<1x!tpu.dma_semaphore, #tpu.memory_space<semaphore_mem>>
      %104 = tpu.memref_squeeze %103 : memref<1x!tpu.dma_semaphore, #tpu.memory_space<semaphore_mem>> -> memref<!tpu.dma_semaphore, #tpu.memory_space<semaphore_mem>>
      tpu.wait_dma2 semaphore(%104 : memref<!tpu.dma_semaphore, #tpu.memory_space<semaphore_mem>>) src(%100 : memref<128xf32, #tpu.memory_space<any>>) dst(%102 : memref<128xf32, #tpu.memory_space<vmem>>)
      %c0_i32_63 = arith.constant 0 : i32
      %c1_i32_64 = arith.constant 1 : i32
      %c0_i32_65 = arith.constant 0 : i32
      %105 = tpu.memref_slice %arg2[%c0_i32_63, %c0_i32_65] : memref<100x128xf32, #tpu.memory_space<any>> -> memref<1x128xf32, #tpu.memory_space<any>>
      %106 = tpu.memref_squeeze %105 : memref<1x128xf32, #tpu.memory_space<any>> -> memref<128xf32, #tpu.memory_space<any>>
      %c0_i32_66 = arith.constant 0 : i32
      %107 = tpu.memref_slice %arg6[%98, %c1_i32_64, %c0_i32_66] : memref<2x8x128xf32, #tpu.memory_space<vmem>> -> memref<1x1x128xf32, #tpu.memory_space<vmem>>
      %108 = tpu.memref_squeeze %107 : memref<1x1x128xf32, #tpu.memory_space<vmem>> -> memref<128xf32, #tpu.memory_space<vmem>>
      %109 = tpu.memref_slice %arg7[%98] : memref<2x!tpu.dma_semaphore, #tpu.memory_space<semaphore_mem>> -> memref<1x!tpu.dma_semaphore, #tpu.memory_space<semaphore_mem>>
      %110 = tpu.memref_squeeze %109 : memref<1x!tpu.dma_semaphore, #tpu.memory_space<semaphore_mem>> -> memref<!tpu.dma_semaphore, #tpu.memory_space<semaphore_mem>>
      tpu.wait_dma2 semaphore(%110 : memref<!tpu.dma_semaphore, #tpu.memory_space<semaphore_mem>>) src(%106 : memref<128xf32, #tpu.memory_space<any>>) dst(%108 : memref<128xf32, #tpu.memory_space<vmem>>)
      %c0_i32_67 = arith.constant 0 : i32
      %c2_i32_68 = arith.constant 2 : i32
      %c0_i32_69 = arith.constant 0 : i32
      %111 = tpu.memref_slice %arg2[%c0_i32_67, %c0_i32_69] : memref<100x128xf32, #tpu.memory_space<any>> -> memref<1x128xf32, #tpu.memory_space<any>>
      %112 = tpu.memref_squeeze %111 : memref<1x128xf32, #tpu.memory_space<any>> -> memref<128xf32, #tpu.memory_space<any>>
      %c0_i32_70 = arith.constant 0 : i32
      %113 = tpu.memref_slice %arg6[%98, %c2_i32_68, %c0_i32_70] : memref<2x8x128xf32, #tpu.memory_space<vmem>> -> memref<1x1x128xf32, #tpu.memory_space<vmem>>
      %114 = tpu.memref_squeeze %113 : memref<1x1x128xf32, #tpu.memory_space<vmem>> -> memref<128xf32, #tpu.memory_space<vmem>>
      %115 = tpu.memref_slice %arg7[%98] : memref<2x!tpu.dma_semaphore, #tpu.memory_space<semaphore_mem>> -> memref<1x!tpu.dma_semaphore, #tpu.memory_space<semaphore_mem>>
      %116 = tpu.memref_squeeze %115 : memref<1x!tpu.dma_semaphore, #tpu.memory_space<semaphore_mem>> -> memref<!tpu.dma_semaphore, #tpu.memory_space<semaphore_mem>>
      tpu.wait_dma2 semaphore(%116 : memref<!tpu.dma_semaphore, #tpu.memory_space<semaphore_mem>>) src(%112 : memref<128xf32, #tpu.memory_space<any>>) dst(%114 : memref<128xf32, #tpu.memory_space<vmem>>)
      %c0_i32_71 = arith.constant 0 : i32
      %c3_i32_72 = arith.constant 3 : i32
      %c0_i32_73 = arith.constant 0 : i32
      %117 = tpu.memref_slice %arg2[%c0_i32_71, %c0_i32_73] : memref<100x128xf32, #tpu.memory_space<any>> -> memref<1x128xf32, #tpu.memory_space<any>>
      %118 = tpu.memref_squeeze %117 : memref<1x128xf32, #tpu.memory_space<any>> -> memref<128xf32, #tpu.memory_space<any>>
      %c0_i32_74 = arith.constant 0 : i32
      %119 = tpu.memref_slice %arg6[%98, %c3_i32_72, %c0_i32_74] : memref<2x8x128xf32, #tpu.memory_space<vmem>> -> memref<1x1x128xf32, #tpu.memory_space<vmem>>
      %120 = tpu.memref_squeeze %119 : memref<1x1x128xf32, #tpu.memory_space<vmem>> -> memref<128xf32, #tpu.memory_space<vmem>>
      %121 = tpu.memref_slice %arg7[%98] : memref<2x!tpu.dma_semaphore, #tpu.memory_space<semaphore_mem>> -> memref<1x!tpu.dma_semaphore, #tpu.memory_space<semaphore_mem>>
      %122 = tpu.memref_squeeze %121 : memref<1x!tpu.dma_semaphore, #tpu.memory_space<semaphore_mem>> -> memref<!tpu.dma_semaphore, #tpu.memory_space<semaphore_mem>>
      tpu.wait_dma2 semaphore(%122 : memref<!tpu.dma_semaphore, #tpu.memory_space<semaphore_mem>>) src(%118 : memref<128xf32, #tpu.memory_space<any>>) dst(%120 : memref<128xf32, #tpu.memory_space<vmem>>)
      %c0_i32_75 = arith.constant 0 : i32
      %c4_i32_76 = arith.constant 4 : i32
      %c0_i32_77 = arith.constant 0 : i32
      %123 = tpu.memref_slice %arg2[%c0_i32_75, %c0_i32_77] : memref<100x128xf32, #tpu.memory_space<any>> -> memref<1x128xf32, #tpu.memory_space<any>>
      %124 = tpu.memref_squeeze %123 : memref<1x128xf32, #tpu.memory_space<any>> -> memref<128xf32, #tpu.memory_space<any>>
      %c0_i32_78 = arith.constant 0 : i32
      %125 = tpu.memref_slice %arg6[%98, %c4_i32_76, %c0_i32_78] : memref<2x8x128xf32, #tpu.memory_space<vmem>> -> memref<1x1x128xf32, #tpu.memory_space<vmem>>
      %126 = tpu.memref_squeeze %125 : memref<1x1x128xf32, #tpu.memory_space<vmem>> -> memref<128xf32, #tpu.memory_space<vmem>>
      %127 = tpu.memref_slice %arg7[%98] : memref<2x!tpu.dma_semaphore, #tpu.memory_space<semaphore_mem>> -> memref<1x!tpu.dma_semaphore, #tpu.memory_space<semaphore_mem>>
      %128 = tpu.memref_squeeze %127 : memref<1x!tpu.dma_semaphore, #tpu.memory_space<semaphore_mem>> -> memref<!tpu.dma_semaphore, #tpu.memory_space<semaphore_mem>>
      tpu.wait_dma2 semaphore(%128 : memref<!tpu.dma_semaphore, #tpu.memory_space<semaphore_mem>>) src(%124 : memref<128xf32, #tpu.memory_space<any>>) dst(%126 : memref<128xf32, #tpu.memory_space<vmem>>)
      %c0_i32_79 = arith.constant 0 : i32
      %c5_i32_80 = arith.constant 5 : i32
      %c0_i32_81 = arith.constant 0 : i32
      %129 = tpu.memref_slice %arg2[%c0_i32_79, %c0_i32_81] : memref<100x128xf32, #tpu.memory_space<any>> -> memref<1x128xf32, #tpu.memory_space<any>>
      %130 = tpu.memref_squeeze %129 : memref<1x128xf32, #tpu.memory_space<any>> -> memref<128xf32, #tpu.memory_space<any>>
      %c0_i32_82 = arith.constant 0 : i32
      %131 = tpu.memref_slice %arg6[%98, %c5_i32_80, %c0_i32_82] : memref<2x8x128xf32, #tpu.memory_space<vmem>> -> memref<1x1x128xf32, #tpu.memory_space<vmem>>
      %132 = tpu.memref_squeeze %131 : memref<1x1x128xf32, #tpu.memory_space<vmem>> -> memref<128xf32, #tpu.memory_space<vmem>>
      %133 = tpu.memref_slice %arg7[%98] : memref<2x!tpu.dma_semaphore, #tpu.memory_space<semaphore_mem>> -> memref<1x!tpu.dma_semaphore, #tpu.memory_space<semaphore_mem>>
      %134 = tpu.memref_squeeze %133 : memref<1x!tpu.dma_semaphore, #tpu.memory_space<semaphore_mem>> -> memref<!tpu.dma_semaphore, #tpu.memory_space<semaphore_mem>>
      tpu.wait_dma2 semaphore(%134 : memref<!tpu.dma_semaphore, #tpu.memory_space<semaphore_mem>>) src(%130 : memref<128xf32, #tpu.memory_space<any>>) dst(%132 : memref<128xf32, #tpu.memory_space<vmem>>)
      %c0_i32_83 = arith.constant 0 : i32
      %c6_i32_84 = arith.constant 6 : i32
      %c0_i32_85 = arith.constant 0 : i32
      %135 = tpu.memref_slice %arg2[%c0_i32_83, %c0_i32_85] : memref<100x128xf32, #tpu.memory_space<any>> -> memref<1x128xf32, #tpu.memory_space<any>>
      %136 = tpu.memref_squeeze %135 : memref<1x128xf32, #tpu.memory_space<any>> -> memref<128xf32, #tpu.memory_space<any>>
      %c0_i32_86 = arith.constant 0 : i32
      %137 = tpu.memref_slice %arg6[%98, %c6_i32_84, %c0_i32_86] : memref<2x8x128xf32, #tpu.memory_space<vmem>> -> memref<1x1x128xf32, #tpu.memory_space<vmem>>
      %138 = tpu.memref_squeeze %137 : memref<1x1x128xf32, #tpu.memory_space<vmem>> -> memref<128xf32, #tpu.memory_space<vmem>>
      %139 = tpu.memref_slice %arg7[%98] : memref<2x!tpu.dma_semaphore, #tpu.memory_space<semaphore_mem>> -> memref<1x!tpu.dma_semaphore, #tpu.memory_space<semaphore_mem>>
      %140 = tpu.memref_squeeze %139 : memref<1x!tpu.dma_semaphore, #tpu.memory_space<semaphore_mem>> -> memref<!tpu.dma_semaphore, #tpu.memory_space<semaphore_mem>>
      tpu.wait_dma2 semaphore(%140 : memref<!tpu.dma_semaphore, #tpu.memory_space<semaphore_mem>>) src(%136 : memref<128xf32, #tpu.memory_space<any>>) dst(%138 : memref<128xf32, #tpu.memory_space<vmem>>)
      %c0_i32_87 = arith.constant 0 : i32
      %c7_i32_88 = arith.constant 7 : i32
      %c0_i32_89 = arith.constant 0 : i32
      %141 = tpu.memref_slice %arg2[%c0_i32_87, %c0_i32_89] : memref<100x128xf32, #tpu.memory_space<any>> -> memref<1x128xf32, #tpu.memory_space<any>>
      %142 = tpu.memref_squeeze %141 : memref<1x128xf32, #tpu.memory_space<any>> -> memref<128xf32, #tpu.memory_space<any>>
      %c0_i32_90 = arith.constant 0 : i32
      %143 = tpu.memref_slice %arg6[%98, %c7_i32_88, %c0_i32_90] : memref<2x8x128xf32, #tpu.memory_space<vmem>> -> memref<1x1x128xf32, #tpu.memory_space<vmem>>
      %144 = tpu.memref_squeeze %143 : memref<1x1x128xf32, #tpu.memory_space<vmem>> -> memref<128xf32, #tpu.memory_space<vmem>>
      %145 = tpu.memref_slice %arg7[%98] : memref<2x!tpu.dma_semaphore, #tpu.memory_space<semaphore_mem>> -> memref<1x!tpu.dma_semaphore, #tpu.memory_space<semaphore_mem>>
      %146 = tpu.memref_squeeze %145 : memref<1x!tpu.dma_semaphore, #tpu.memory_space<semaphore_mem>> -> memref<!tpu.dma_semaphore, #tpu.memory_space<semaphore_mem>>
      tpu.wait_dma2 semaphore(%146 : memref<!tpu.dma_semaphore, #tpu.memory_space<semaphore_mem>>) src(%142 : memref<128xf32, #tpu.memory_space<any>>) dst(%144 : memref<128xf32, #tpu.memory_space<vmem>>)
      %c1_i32_91 = arith.constant 1 : i32
      %147 = arith.addi %97, %c1_i32_91 : i32
      %c16_i32_92 = arith.constant 16 : i32
      %148 = arith.cmpi slt, %147, %c16_i32_92 : i32
      %149 = arith.extui %148 : i1 to i32
      %c0_i32_93 = arith.constant 0 : i32
      %150 = arith.cmpi ne, %149, %c0_i32_93 : i32
      scf.if %150 {
        %c1_i32_100 = arith.constant 1 : i32
        %157 = arith.addi %97, %c1_i32_100 : i32
        %c1_i32_101 = arith.constant 1 : i32
        %158 = arith.xori %98, %c1_i32_101 : i32
        %c0_i32_102 = arith.constant 0 : i32
        %159 = arith.addi %0, %c0_i32_102 : i32
        %160 = arith.addi %159, %157 : i32
        %161 = arith.index_cast %160 : i32 to index
        %162 = memref.load %arg1[%161] : memref<128xi32, #tpu.memory_space<smem>>
        %c0_i32_103 = arith.constant 0 : i32
        %c0_i32_104 = arith.constant 0 : i32
        %163 = tpu.memref_slice %arg2[%162, %c0_i32_104] : memref<100x128xf32, #tpu.memory_space<any>> -> memref<1x128xf32, #tpu.memory_space<any>>
        %164 = tpu.memref_squeeze %163 : memref<1x128xf32, #tpu.memory_space<any>> -> memref<128xf32, #tpu.memory_space<any>>
        %c0_i32_105 = arith.constant 0 : i32
        %165 = tpu.memref_slice %arg6[%158, %c0_i32_103, %c0_i32_105] : memref<2x8x128xf32, #tpu.memory_space<vmem>> -> memref<1x1x128xf32, #tpu.memory_space<vmem>>
        %166 = tpu.memref_squeeze %165 : memref<1x1x128xf32, #tpu.memory_space<vmem>> -> memref<128xf32, #tpu.memory_space<vmem>>
        %167 = tpu.memref_slice %arg7[%158] : memref<2x!tpu.dma_semaphore, #tpu.memory_space<semaphore_mem>> -> memref<1x!tpu.dma_semaphore, #tpu.memory_space<semaphore_mem>>
        %168 = tpu.memref_squeeze %167 : memref<1x!tpu.dma_semaphore, #tpu.memory_space<semaphore_mem>> -> memref<!tpu.dma_semaphore, #tpu.memory_space<semaphore_mem>>
        tpu.enqueue_dma source(%164 : memref<128xf32, #tpu.memory_space<any>>) target(%166 : memref<128xf32, #tpu.memory_space<vmem>>) target_semaphore(%168 : memref<!tpu.dma_semaphore, #tpu.memory_space<semaphore_mem>>)
        %c16_i32_106 = arith.constant 16 : i32
        %169 = arith.addi %0, %c16_i32_106 : i32
        %170 = arith.addi %169, %157 : i32
        %171 = arith.index_cast %170 : i32 to index
        %172 = memref.load %arg1[%171] : memref<128xi32, #tpu.memory_space<smem>>
        %c1_i32_107 = arith.constant 1 : i32
        %c0_i32_108 = arith.constant 0 : i32
        %173 = tpu.memref_slice %arg2[%172, %c0_i32_108] : memref<100x128xf32, #tpu.memory_space<any>> -> memref<1x128xf32, #tpu.memory_space<any>>
        %174 = tpu.memref_squeeze %173 : memref<1x128xf32, #tpu.memory_space<any>> -> memref<128xf32, #tpu.memory_space<any>>
        %c0_i32_109 = arith.constant 0 : i32
        %175 = tpu.memref_slice %arg6[%158, %c1_i32_107, %c0_i32_109] : memref<2x8x128xf32, #tpu.memory_space<vmem>> -> memref<1x1x128xf32, #tpu.memory_space<vmem>>
        %176 = tpu.memref_squeeze %175 : memref<1x1x128xf32, #tpu.memory_space<vmem>> -> memref<128xf32, #tpu.memory_space<vmem>>
        %177 = tpu.memref_slice %arg7[%158] : memref<2x!tpu.dma_semaphore, #tpu.memory_space<semaphore_mem>> -> memref<1x!tpu.dma_semaphore, #tpu.memory_space<semaphore_mem>>
        %178 = tpu.memref_squeeze %177 : memref<1x!tpu.dma_semaphore, #tpu.memory_space<semaphore_mem>> -> memref<!tpu.dma_semaphore, #tpu.memory_space<semaphore_mem>>
        tpu.enqueue_dma source(%174 : memref<128xf32, #tpu.memory_space<any>>) target(%176 : memref<128xf32, #tpu.memory_space<vmem>>) target_semaphore(%178 : memref<!tpu.dma_semaphore, #tpu.memory_space<semaphore_mem>>)
        %c32_i32_110 = arith.constant 32 : i32
        %179 = arith.addi %0, %c32_i32_110 : i32
        %180 = arith.addi %179, %157 : i32
        %181 = arith.index_cast %180 : i32 to index
        %182 = memref.load %arg1[%181] : memref<128xi32, #tpu.memory_space<smem>>
        %c2_i32_111 = arith.constant 2 : i32
        %c0_i32_112 = arith.constant 0 : i32
        %183 = tpu.memref_slice %arg2[%182, %c0_i32_112] : memref<100x128xf32, #tpu.memory_space<any>> -> memref<1x128xf32, #tpu.memory_space<any>>
        %184 = tpu.memref_squeeze %183 : memref<1x128xf32, #tpu.memory_space<any>> -> memref<128xf32, #tpu.memory_space<any>>
        %c0_i32_113 = arith.constant 0 : i32
        %185 = tpu.memref_slice %arg6[%158, %c2_i32_111, %c0_i32_113] : memref<2x8x128xf32, #tpu.memory_space<vmem>> -> memref<1x1x128xf32, #tpu.memory_space<vmem>>
        %186 = tpu.memref_squeeze %185 : memref<1x1x128xf32, #tpu.memory_space<vmem>> -> memref<128xf32, #tpu.memory_space<vmem>>
        %187 = tpu.memref_slice %arg7[%158] : memref<2x!tpu.dma_semaphore, #tpu.memory_space<semaphore_mem>> -> memref<1x!tpu.dma_semaphore, #tpu.memory_space<semaphore_mem>>
        %188 = tpu.memref_squeeze %187 : memref<1x!tpu.dma_semaphore, #tpu.memory_space<semaphore_mem>> -> memref<!tpu.dma_semaphore, #tpu.memory_space<semaphore_mem>>
        tpu.enqueue_dma source(%184 : memref<128xf32, #tpu.memory_space<any>>) target(%186 : memref<128xf32, #tpu.memory_space<vmem>>) target_semaphore(%188 : memref<!tpu.dma_semaphore, #tpu.memory_space<semaphore_mem>>)
        %c48_i32_114 = arith.constant 48 : i32
        %189 = arith.addi %0, %c48_i32_114 : i32
        %190 = arith.addi %189, %157 : i32
        %191 = arith.index_cast %190 : i32 to index
        %192 = memref.load %arg1[%191] : memref<128xi32, #tpu.memory_space<smem>>
        %c3_i32_115 = arith.constant 3 : i32
        %c0_i32_116 = arith.constant 0 : i32
        %193 = tpu.memref_slice %arg2[%192, %c0_i32_116] : memref<100x128xf32, #tpu.memory_space<any>> -> memref<1x128xf32, #tpu.memory_space<any>>
        %194 = tpu.memref_squeeze %193 : memref<1x128xf32, #tpu.memory_space<any>> -> memref<128xf32, #tpu.memory_space<any>>
        %c0_i32_117 = arith.constant 0 : i32
        %195 = tpu.memref_slice %arg6[%158, %c3_i32_115, %c0_i32_117] : memref<2x8x128xf32, #tpu.memory_space<vmem>> -> memref<1x1x128xf32, #tpu.memory_space<vmem>>
        %196 = tpu.memref_squeeze %195 : memref<1x1x128xf32, #tpu.memory_space<vmem>> -> memref<128xf32, #tpu.memory_space<vmem>>
        %197 = tpu.memref_slice %arg7[%158] : memref<2x!tpu.dma_semaphore, #tpu.memory_space<semaphore_mem>> -> memref<1x!tpu.dma_semaphore, #tpu.memory_space<semaphore_mem>>
        %198 = tpu.memref_squeeze %197 : memref<1x!tpu.dma_semaphore, #tpu.memory_space<semaphore_mem>> -> memref<!tpu.dma_semaphore, #tpu.memory_space<semaphore_mem>>
        tpu.enqueue_dma source(%194 : memref<128xf32, #tpu.memory_space<any>>) target(%196 : memref<128xf32, #tpu.memory_space<vmem>>) target_semaphore(%198 : memref<!tpu.dma_semaphore, #tpu.memory_space<semaphore_mem>>)
        %c64_i32_118 = arith.constant 64 : i32
        %199 = arith.addi %0, %c64_i32_118 : i32
        %200 = arith.addi %199, %157 : i32
        %201 = arith.index_cast %200 : i32 to index
        %202 = memref.load %arg1[%201] : memref<128xi32, #tpu.memory_space<smem>>
        %c4_i32_119 = arith.constant 4 : i32
        %c0_i32_120 = arith.constant 0 : i32
        %203 = tpu.memref_slice %arg2[%202, %c0_i32_120] : memref<100x128xf32, #tpu.memory_space<any>> -> memref<1x128xf32, #tpu.memory_space<any>>
        %204 = tpu.memref_squeeze %203 : memref<1x128xf32, #tpu.memory_space<any>> -> memref<128xf32, #tpu.memory_space<any>>
        %c0_i32_121 = arith.constant 0 : i32
        %205 = tpu.memref_slice %arg6[%158, %c4_i32_119, %c0_i32_121] : memref<2x8x128xf32, #tpu.memory_space<vmem>> -> memref<1x1x128xf32, #tpu.memory_space<vmem>>
        %206 = tpu.memref_squeeze %205 : memref<1x1x128xf32, #tpu.memory_space<vmem>> -> memref<128xf32, #tpu.memory_space<vmem>>
        %207 = tpu.memref_slice %arg7[%158] : memref<2x!tpu.dma_semaphore, #tpu.memory_space<semaphore_mem>> -> memref<1x!tpu.dma_semaphore, #tpu.memory_space<semaphore_mem>>
        %208 = tpu.memref_squeeze %207 : memref<1x!tpu.dma_semaphore, #tpu.memory_space<semaphore_mem>> -> memref<!tpu.dma_semaphore, #tpu.memory_space<semaphore_mem>>
        tpu.enqueue_dma source(%204 : memref<128xf32, #tpu.memory_space<any>>) target(%206 : memref<128xf32, #tpu.memory_space<vmem>>) target_semaphore(%208 : memref<!tpu.dma_semaphore, #tpu.memory_space<semaphore_mem>>)
        %c80_i32_122 = arith.constant 80 : i32
        %209 = arith.addi %0, %c80_i32_122 : i32
        %210 = arith.addi %209, %157 : i32
        %211 = arith.index_cast %210 : i32 to index
        %212 = memref.load %arg1[%211] : memref<128xi32, #tpu.memory_space<smem>>
        %c5_i32_123 = arith.constant 5 : i32
        %c0_i32_124 = arith.constant 0 : i32
        %213 = tpu.memref_slice %arg2[%212, %c0_i32_124] : memref<100x128xf32, #tpu.memory_space<any>> -> memref<1x128xf32, #tpu.memory_space<any>>
        %214 = tpu.memref_squeeze %213 : memref<1x128xf32, #tpu.memory_space<any>> -> memref<128xf32, #tpu.memory_space<any>>
        %c0_i32_125 = arith.constant 0 : i32
        %215 = tpu.memref_slice %arg6[%158, %c5_i32_123, %c0_i32_125] : memref<2x8x128xf32, #tpu.memory_space<vmem>> -> memref<1x1x128xf32, #tpu.memory_space<vmem>>
        %216 = tpu.memref_squeeze %215 : memref<1x1x128xf32, #tpu.memory_space<vmem>> -> memref<128xf32, #tpu.memory_space<vmem>>
        %217 = tpu.memref_slice %arg7[%158] : memref<2x!tpu.dma_semaphore, #tpu.memory_space<semaphore_mem>> -> memref<1x!tpu.dma_semaphore, #tpu.memory_space<semaphore_mem>>
        %218 = tpu.memref_squeeze %217 : memref<1x!tpu.dma_semaphore, #tpu.memory_space<semaphore_mem>> -> memref<!tpu.dma_semaphore, #tpu.memory_space<semaphore_mem>>
        tpu.enqueue_dma source(%214 : memref<128xf32, #tpu.memory_space<any>>) target(%216 : memref<128xf32, #tpu.memory_space<vmem>>) target_semaphore(%218 : memref<!tpu.dma_semaphore, #tpu.memory_space<semaphore_mem>>)
        %c96_i32_126 = arith.constant 96 : i32
        %219 = arith.addi %0, %c96_i32_126 : i32
        %220 = arith.addi %219, %157 : i32
        %221 = arith.index_cast %220 : i32 to index
        %222 = memref.load %arg1[%221] : memref<128xi32, #tpu.memory_space<smem>>
        %c6_i32_127 = arith.constant 6 : i32
        %c0_i32_128 = arith.constant 0 : i32
        %223 = tpu.memref_slice %arg2[%222, %c0_i32_128] : memref<100x128xf32, #tpu.memory_space<any>> -> memref<1x128xf32, #tpu.memory_space<any>>
        %224 = tpu.memref_squeeze %223 : memref<1x128xf32, #tpu.memory_space<any>> -> memref<128xf32, #tpu.memory_space<any>>
        %c0_i32_129 = arith.constant 0 : i32
        %225 = tpu.memref_slice %arg6[%158, %c6_i32_127, %c0_i32_129] : memref<2x8x128xf32, #tpu.memory_space<vmem>> -> memref<1x1x128xf32, #tpu.memory_space<vmem>>
        %226 = tpu.memref_squeeze %225 : memref<1x1x128xf32, #tpu.memory_space<vmem>> -> memref<128xf32, #tpu.memory_space<vmem>>
        %227 = tpu.memref_slice %arg7[%158] : memref<2x!tpu.dma_semaphore, #tpu.memory_space<semaphore_mem>> -> memref<1x!tpu.dma_semaphore, #tpu.memory_space<semaphore_mem>>
        %228 = tpu.memref_squeeze %227 : memref<1x!tpu.dma_semaphore, #tpu.memory_space<semaphore_mem>> -> memref<!tpu.dma_semaphore, #tpu.memory_space<semaphore_mem>>
        tpu.enqueue_dma source(%224 : memref<128xf32, #tpu.memory_space<any>>) target(%226 : memref<128xf32, #tpu.memory_space<vmem>>) target_semaphore(%228 : memref<!tpu.dma_semaphore, #tpu.memory_space<semaphore_mem>>)
        %c112_i32_130 = arith.constant 112 : i32
        %229 = arith.addi %0, %c112_i32_130 : i32
        %230 = arith.addi %229, %157 : i32
        %231 = arith.index_cast %230 : i32 to index
        %232 = memref.load %arg1[%231] : memref<128xi32, #tpu.memory_space<smem>>
        %c7_i32_131 = arith.constant 7 : i32
        %c0_i32_132 = arith.constant 0 : i32
        %233 = tpu.memref_slice %arg2[%232, %c0_i32_132] : memref<100x128xf32, #tpu.memory_space<any>> -> memref<1x128xf32, #tpu.memory_space<any>>
        %234 = tpu.memref_squeeze %233 : memref<1x128xf32, #tpu.memory_space<any>> -> memref<128xf32, #tpu.memory_space<any>>
        %c0_i32_133 = arith.constant 0 : i32
        %235 = tpu.memref_slice %arg6[%158, %c7_i32_131, %c0_i32_133] : memref<2x8x128xf32, #tpu.memory_space<vmem>> -> memref<1x1x128xf32, #tpu.memory_space<vmem>>
        %236 = tpu.memref_squeeze %235 : memref<1x1x128xf32, #tpu.memory_space<vmem>> -> memref<128xf32, #tpu.memory_space<vmem>>
        %237 = tpu.memref_slice %arg7[%158] : memref<2x!tpu.dma_semaphore, #tpu.memory_space<semaphore_mem>> -> memref<1x!tpu.dma_semaphore, #tpu.memory_space<semaphore_mem>>
        %238 = tpu.memref_squeeze %237 : memref<1x!tpu.dma_semaphore, #tpu.memory_space<semaphore_mem>> -> memref<!tpu.dma_semaphore, #tpu.memory_space<semaphore_mem>>
        tpu.enqueue_dma source(%234 : memref<128xf32, #tpu.memory_space<any>>) target(%236 : memref<128xf32, #tpu.memory_space<vmem>>) target_semaphore(%238 : memref<!tpu.dma_semaphore, #tpu.memory_space<semaphore_mem>>)
      } else {
      }
      %c0_94 = arith.constant 0 : index
      %c0_95 = arith.constant 0 : index
      %151 = vector.load %arg8[%c0_94, %c0_95] : memref<8x128xf32, #tpu.memory_space<vmem>>, vector<8x128xf32>
      %152 = arith.index_cast %98 : i32 to index
      %c0_96 = arith.constant 0 : index
      %c0_97 = arith.constant 0 : index
      %153 = vector.load %arg6[%152, %c0_96, %c0_97] : memref<2x8x128xf32, #tpu.memory_space<vmem>>, vector<1x8x128xf32>
      %154 = vector.shape_cast %153 : vector<1x8x128xf32> to vector<8x128xf32>
      %155 = arith.maximumf %151, %154 : vector<8x128xf32>
      %c0_98 = arith.constant 0 : index
      %c0_99 = arith.constant 0 : index
      %156 = vector.load %arg8[%c0_98, %c0_99] : memref<8x128xf32, #tpu.memory_space<vmem>>, vector<8x128xf32>
      tpu.vector_store %arg8[%c0_98, %c0_99], %155 {strides = array<i32>} : memref<8x128xf32, #tpu.memory_space<vmem>>, vector<8x128xf32>,
    }
    %c16_i32_45 = arith.constant 16 : i32
    %c0_46 = arith.constant 0 : index
    %c0_47 = arith.constant 0 : index
    %84 = vector.load %arg8[%c0_46, %c0_47] : memref<8x128xf32, #tpu.memory_space<vmem>>, vector<8x128xf32>
    %c0_48 = arith.constant 0 : index
    %c0_49 = arith.constant 0 : index
    %85 = vector.load %arg3[%c0_48, %c0_49] : memref<128x128xf32, #tpu.memory_space<vmem>>, vector<128x128xf32>
    %cst_50 = arith.constant dense<0.000000e+00> : vector<8x128xf32>
    %86 = tpu.matmul %84, %85, %cst_50 {dimension_numbers = #tpu.dot_dimension_numbers<[1], [0], [0], [1], [0, 0, 1, 1], [], []>} : vector<8x128xf32>, vector<128x128xf32>, vector<8x128xf32> -> vector<8x128xf32>
    %c0_51 = arith.constant 0 : index
    %c0_52 = arith.constant 0 : index
    %87 = vector.load %arg4[%c0_51, %c0_52] : memref<1x128xf32, #tpu.memory_space<vmem>>, vector<1x128xf32>
    %88 = vector.broadcast %87 : vector<1x128xf32> to vector<8x128xf32>
    %89 = arith.addf %86, %88 : vector<8x128xf32>
    %90 = arith.negf %89 : vector<8x128xf32>
    %91 = math.exp %90 : vector<8x128xf32>
    %cst_53 = arith.constant 1.000000e+00 : f32
    %92 = vector.broadcast %cst_53 : f32 to vector<8x128xf32>
    %93 = arith.addf %92, %91 : vector<8x128xf32>
    %94 = arith.divf %92, %93 : vector<8x128xf32>
    %c0_54 = arith.constant 0 : index
    %c0_55 = arith.constant 0 : index
    %95 = vector.load %arg5[%c0_54, %c0_55] : memref<8x128xf32, #tpu.memory_space<vmem>>, vector<8x128xf32>
    tpu.vector_store %arg5[%c0_54, %c0_55], %94 {strides = array<i32>} : memref<8x128xf32, #tpu.memory_space<vmem>>, vector<8x128xf32>,
    return
  }
  func.func @transform_1(%arg0: i32, %arg1: memref<128xi32, #tpu.memory_space<smem>>) -> (i32, i32) {
    %c0_i32 = arith.constant 0 : i32
    %c0_i32_0 = arith.constant 0 : i32
    %c0_i32_1 = arith.constant 0 : i32
    return %c0_i32, %c0_i32_0 : i32, i32
  }
  func.func @transform_2(%arg0: i32, %arg1: memref<128xi32, #tpu.memory_space<smem>>) -> (i32, i32) {
    %c0_i32 = arith.constant 0 : i32
    %c0_i32_0 = arith.constant 0 : i32
    %c0_i32_1 = arith.constant 0 : i32
    return %c0_i32, %c0_i32_0 : i32, i32
  }
  func.func @transform_3(%arg0: i32, %arg1: memref<128xi32, #tpu.memory_space<smem>>) -> (i32, i32) {
    %c0_i32 = arith.constant 0 : i32
    %c0_i32_0 = arith.constant 0 : i32
    return %arg0, %c0_i32 : i32, i32
  }
}

</mosaic_0001>

<bundles_post_ra>
// kernel: tpu_custom_call.1
= control target key start
LH: loop header
LB: loop body
LE: loop exit
PB: predicated region body
PF: predicated region fallthrough
CT: control target
= control target key end

     0   :  { %s1059_s18 = smov [#allocation6]   ;;  %s1465_s0 = inlined_call_operand.hbm [shape: s32[128], index: 0, kind: input, shape index: {}]   ;;  %s1466_s1 = inlined_call_operand.hbm [shape: f32[100,128], index: 1, kind: input, shape index: {}]   ;;  %s1467_s2 = inlined_call_operand.hbm [shape: f32[128,128], index: 2, kind: input, shape index: {}]   ;;  %s1468_s3 = inlined_call_operand.vmem [shape: f32[1,128], index: 3, kind: input, shape index: {}]   ;;  %s1469_s4 = inlined_call_operand.hbm [shape: f32[8,128], index: 4, kind: output, shape index: {}]  }
   0x1   :  { %s10_s17 = sshll.u32 %s1465_s0, 4  ;;  %s11_s17 = int_to_ptr.hbm [resolvable:$true] %s10_s17 }
   0x2   :  { %13 = dma.hbm_to_smem %s11_s17, 16, %s1059_s18, [#allocation5] }
   0x3   :  { %1047 = dma.done.wait [#allocation5], 16 }
   0x4   :  { %1048 = vsyncadd [#allocation5], 4294967280 }
   0x5   :  { %16 = sfence }
   0x6   :  { %17 = vsyncpa [#allocation8], 0 }
   0x7   :  { %18 = vsyncpa [#allocation9], 0  ;;  %s23_s21 = sshll.u32 %s1467_s2, 4  ;;  %s1060_s22 = smov [#allocation7]   ;;  %s24_s21 = int_to_ptr.hbm [resolvable:$true] %s23_s21 }
   0x8   :  { %s25_s23 = sshll.u32 %s1060_s22, 4  ;;  %s1061_s24 = smov 128   ;;  %s26_s23 = int_to_ptr.vmem [resolvable:$true] %s25_s23 }
   0x9   :  { %s1062_s25 = smov 8  }
   0xa   :  { %31 = dma.hbm_to_vmem [thread:$0]  %s24_s21, 2048, %s26_s23, [#allocation8], %s1061_s24, %s1061_s24, %s1062_s25  }
   0xb   :  { %1049 = dma.done.wait [#allocation8], 2048  }
   0xc   :  { %1050 = vsyncadd [#allocation8], 4294965248  ;;  %s40_s0 = sld [smem:[#allocation6]]  ;;  %s1063_s26 = smov [#allocation2]   ;;  %v1064_v0 = vmov -inf  }
   0xd   :  { %s1105_s27 = sshll.u32 %s1063_s26, 4  ;;  %39 = vst [vmem:[#allocation4] sm:$0xff] %v1064_v0  ;;  %s494_s28 = sld [smem:[#allocation6 + $0x10]]  ;;  %s52_s27 = int_to_ptr.vmem [resolvable:$true] %s1105_s27 }
   0xe   :  { %s1065_s29 = smov [#allocation2 + $0x1]   ;;  %s1110_s30 = sld [smem:[#allocation6 + $0x20]] }
   0xf   :  { %s1108_s2 = sshll.u32 %s1065_s29, 4  ;;  %s1066_s5 = smov [#allocation2 + $0x2]   ;;  %s69_s2 = int_to_ptr.vmem [resolvable:$true] %s1108_s2 }
  0x10   :  { %s1113_s6 = sshll.u32 %s1066_s5, 4  ;;  %s1115_s7 = sld [smem:[#allocation6 + $0x30]]  ;;  %s86_s6 = int_to_ptr.vmem [resolvable:$true] %s1113_s6 }
  0x11   :  { %s1067_s11 = smov [#allocation2 + $0x3]   ;;  %s1129_s22 = scalar_lea.hbm %s1466_s1, 104 }
  0x12   :  { %s41_s10 = scalar_lea.hbm %s1466_s1, %s40_s0  ;;  %s1121_s12 = sshll.u32 %s1067_s11, 4  ;;  %s103_s12 = int_to_ptr.vmem [resolvable:$true] %s1121_s12 }
  0x13   :  { %s49_s13 = sshll.u32 %s41_s10, 4  ;;  %s57_s16 = scalar_lea.hbm %s1466_s1, %s494_s28  ;;  %s50_s13 = int_to_ptr.hbm [resolvable:$true] %s49_s13 }
  0x14   :  { %s66_s17 = sshll.u32 %s57_s16, 4  ;;  %s603_s18 = sshra.s32 %s50_s13, 4  ;;  %s604_s18 = int_to_ptr.hbm [resolvable:$true] %s603_s18  ;;  %s67_s17 = int_to_ptr.hbm [resolvable:$true] %s66_s17 }
  0x15   :  { %s605_s19 = scalar_lea.hbm %s604_s18, 1  ;;  %p608_p1 = scmp.lt.s32.totalorder %s604_s18, %s1466_s1 }
  0x16   :  { %p606_p0 = scmp.ne.s32.totalorder %s604_s18, %s605_s19  ;;  %p609_p2 = scmp.lt.s32.totalorder %s1129_s22, %s605_s19 }
  0x18   :  { %p610_p3 = por %p609_p2, %p608_p1 }
  0x1a   :  { %p611_p4 = pnand %p610_p3, %p606_p0 }
  0x1c   :  { %614 = shalt.err (!%p611_p4)  }
  0x1d   :  { %54 = dma.hbm_to_vmem [thread:$0]  %s50_s13, 16, %s52_s27, [#allocation3] }
  0x1e   :  { %s74_s26 = scalar_lea.hbm %s1466_s1, %s1110_s30  ;;  %s627_s28 = sshra.s32 %s67_s17, 4  ;;  %s628_s28 = int_to_ptr.hbm [resolvable:$true] %s627_s28 }
  0x1f   :  { %s629_s29 = scalar_lea.hbm %s628_s28, 1  ;;  %p632_p6 = scmp.lt.s32.totalorder %s628_s28, %s1466_s1 }
  0x20   :  { %p630_p5 = scmp.ne.s32.totalorder %s628_s28, %s629_s29  ;;  %p633_p7 = scmp.lt.s32.totalorder %s1129_s22, %s629_s29 }
  0x22   :  { %p634_p8 = por %p633_p7, %p632_p6 }
  0x24   :  { %p635_p9 = pnand %p634_p8, %p630_p5 }
  0x26   :  { %638 = shalt.err (!%p635_p9)  }
  0x27   :  { %71 = dma.hbm_to_vmem [thread:$0]  %s67_s17, 16, %s69_s2, [#allocation3] }
  0x28   :  { %s83_s27 = sshll.u32 %s74_s26, 4  ;;  %s91_s10 = scalar_lea.hbm %s1466_s1, %s1115_s7  ;;  %s84_s27 = int_to_ptr.hbm [resolvable:$true] %s83_s27 }
  0x29   :  { %s100_s11 = sshll.u32 %s91_s10, 4  ;;  %s651_s13 = sshra.s32 %s84_s27, 4  ;;  %s652_s13 = int_to_ptr.hbm [resolvable:$true] %s651_s13  ;;  %s101_s11 = int_to_ptr.hbm [resolvable:$true] %s100_s11 }
  0x2a   :  { %s653_s14 = scalar_lea.hbm %s652_s13, 1  ;;  %p656_p11 = scmp.lt.s32.totalorder %s652_s13, %s1466_s1 }
  0x2b   :  { %p654_p10 = scmp.ne.s32.totalorder %s652_s13, %s653_s14  ;;  %p657_p12 = scmp.lt.s32.totalorder %s1129_s22, %s653_s14 }
  0x2d   :  { %p658_p13 = por %p657_p12, %p656_p11 }
  0x2f   :  { %p659_p0 = pnand %p658_p13, %p654_p10 }
  0x31   :  { %662 = shalt.err (!%p659_p0)  }
  0x32   :  { %88 = dma.hbm_to_vmem [thread:$0]  %s84_s27, 16, %s86_s6, [#allocation3] }
  0x33   :  { %s675_s2 = sshra.s32 %s101_s11, 4  ;;  %s676_s2 = int_to_ptr.hbm [resolvable:$true] %s675_s2 }
  0x34   :  { %s677_s7 = scalar_lea.hbm %s676_s2, 1  ;;  %p680_p2 = scmp.lt.s32.totalorder %s676_s2, %s1466_s1 }
  0x35   :  { %p678_p1 = scmp.ne.s32.totalorder %s676_s2, %s677_s7  ;;  %p681_p3 = scmp.lt.s32.totalorder %s1129_s22, %s677_s7 }
  0x37   :  { %p682_p4 = por %p681_p3, %p680_p2 }
  0x39   :  { %p683_p5 = pnand %p682_p4, %p678_p1 }
  0x3b   :  { %686 = shalt.err (!%p683_p5)  }
  0x3c   :  { %105 = dma.hbm_to_vmem [thread:$0]  %s101_s11, 16, %s103_s12, [#allocation3] }
  0x3d   :  { %s497_s19 = sld [smem:[#allocation6 + $0x40]]  ;;  %s1068_s20 = smov [#allocation2 + $0x4]  }
  0x3e   :  { %s119_s21 = sshll.u32 %s1068_s20, 4  ;;  %s498_s23 = sld [smem:[#allocation6 + $0x50]]  ;;  %s120_s21 = int_to_ptr.vmem [resolvable:$true] %s119_s21 }
  0x3f   :  { %s1069_s6 = smov [#allocation2 + $0x5]   ;;  %s1162_s25 = sld [smem:[#allocation6 + $0x60]] }
  0x40   :  { %s1160_s24 = sshll.u32 %s1069_s6, 4  ;;  %s1070_s0 = smov [#allocation2 + $0x6]   ;;  %s137_s24 = int_to_ptr.vmem [resolvable:$true] %s1160_s24 }
  0x41   :  { %s1165_s26 = sshll.u32 %s1070_s0, 4  ;;  %s1167_s28 = sld [smem:[#allocation6 + $0x70]]  ;;  %s154_s26 = int_to_ptr.vmem [resolvable:$true] %s1165_s26 }
  0x43   :  { %s108_s5 = scalar_lea.hbm %s1466_s1, %s497_s19 }
  0x44   :  { %s117_s8 = sshll.u32 %s108_s5, 4  ;;  %s125_s30 = scalar_lea.hbm %s1466_s1, %s498_s23  ;;  %s118_s8 = int_to_ptr.hbm [resolvable:$true] %s117_s8 }
  0x45   :  { %s134_s10 = sshll.u32 %s125_s30, 4  ;;  %s699_s11 = sshra.s32 %s118_s8, 4  ;;  %s700_s11 = int_to_ptr.hbm [resolvable:$true] %s699_s11  ;;  %s135_s10 = int_to_ptr.hbm [resolvable:$true] %s134_s10 }
  0x46   :  { %s701_s13 = scalar_lea.hbm %s700_s11, 1  ;;  %p704_p7 = scmp.lt.s32.totalorder %s700_s11, %s1466_s1 }
  0x47   :  { %p702_p6 = scmp.ne.s32.totalorder %s700_s11, %s701_s13  ;;  %p705_p8 = scmp.lt.s32.totalorder %s1129_s22, %s701_s13 }
  0x49   :  { %p706_p9 = por %p705_p8, %p704_p7 }
  0x4b   :  { %p707_p10 = pnand %p706_p9, %p702_p6 }
  0x4d   :  { %710 = shalt.err (!%p707_p10)  }
  0x4e   :  { %122 = dma.hbm_to_vmem [thread:$0]  %s118_s8, 16, %s120_s21, [#allocation3] }
  0x4f   :  { %s142_s7 = scalar_lea.hbm %s1466_s1, %s1162_s25  ;;  %s723_s17 = sshra.s32 %s135_s10, 4  ;;  %s724_s17 = int_to_ptr.hbm [resolvable:$true] %s723_s17 }
  0x50   :  { %s725_s18 = scalar_lea.hbm %s724_s17, 1  ;;  %p728_p12 = scmp.lt.s32.totalorder %s724_s17, %s1466_s1 }
  0x51   :  { %p726_p11 = scmp.ne.s32.totalorder %s724_s17, %s725_s18  ;;  %p729_p13 = scmp.lt.s32.totalorder %s1129_s22, %s725_s18 }
  0x53   :  { %p730_p0 = por %p729_p13, %p728_p12 }
  0x55   :  { %p731_p1 = pnand %p730_p0, %p726_p11 }
  0x57   :  { %734 = shalt.err (!%p731_p1)  }
  0x58   :  { %139 = dma.hbm_to_vmem [thread:$0]  %s135_s10, 16, %s137_s24, [#allocation3] }
  0x59   :  { %s151_s21 = sshll.u32 %s142_s7, 4  ;;  %s159_s25 = scalar_lea.hbm %s1466_s1, %s1167_s28  ;;  %s152_s21 = int_to_ptr.hbm [resolvable:$true] %s151_s21 }
  0x5a   :  { %s168_s0 = sshll.u32 %s159_s25, 4  ;;  %s747_s12 = sshra.s32 %s152_s21, 4  ;;  %s748_s12 = int_to_ptr.hbm [resolvable:$true] %s747_s12  ;;  %s169_s0 = int_to_ptr.hbm [resolvable:$true] %s168_s0 }
  0x5b   :  { %s749_s29 = scalar_lea.hbm %s748_s12, 1  ;;  %p752_p3 = scmp.lt.s32.totalorder %s748_s12, %s1466_s1 }
  0x5c   :  { %p750_p2 = scmp.ne.s32.totalorder %s748_s12, %s749_s29  ;;  %p753_p4 = scmp.lt.s32.totalorder %s1129_s22, %s749_s29 }
  0x5e   :  { %p754_p5 = por %p753_p4, %p752_p3 }
  0x60   :  { %p755_p6 = pnand %p754_p5, %p750_p2 }
  0x62   :  { %758 = shalt.err (!%p755_p6)  }
  0x63   :  { %156 = dma.hbm_to_vmem [thread:$0]  %s152_s21, 16, %s154_s26, [#allocation3] }
  0x64   :  { %s1071_s24 = smov [#allocation2 + $0x7]   ;;  %s771_s27 = sshra.s32 %s169_s0, 4  ;;  %s772_s27 = int_to_ptr.hbm [resolvable:$true] %s771_s27 }
  0x65   :  { %s170_s28 = sshll.u32 %s1071_s24, 4  ;;  %s773_s9 = scalar_lea.hbm %s772_s27, 1  ;;  %s171_s28 = int_to_ptr.vmem [resolvable:$true] %s170_s28 }
  0x66   :  { %p774_p7 = scmp.ne.s32.totalorder %s772_s27, %s773_s9  ;;  %p776_p8 = scmp.lt.s32.totalorder %s772_s27, %s1466_s1 }
  0x67   :  { %p777_p9 = scmp.lt.s32.totalorder %s1129_s22, %s773_s9 }
  0x69   :  { %p778_p10 = por %p777_p9, %p776_p8 }
  0x6b   :  { %p779_p11 = pnand %p778_p10, %p774_p7 }
  0x6d   :  { %782 = shalt.err (!%p779_p11)  }
  0x6e   :  { %173 = dma.hbm_to_vmem [thread:$0]  %s169_s0, 16, %s171_s28, [#allocation3] }
  0x6f   :  { %s1204_s11 = smov 0  }
  0x70 LB: > { %s1207_s26 = sand.u32 1, %s1057_s11  ;;  %s1057_s11 = sphi %s1204_s11, %s1210_s11  }
  0x71   : > { %s181_s13 = scalar_lea.sflag [#allocation3], %s1207_s26 }
  0x72   : > { %1051 = dma.done.wait %s181_s13, 128 }
  0x73   : > { %1052 = vsyncadd %s181_s13, 4294967168  ;;  %s1210_s11 = sadd.s32 1, %s1057_s11   ;;  %s203_s14 = sxor.u32 1, %s1207_s26 }
  0x74   : > { %p501_p12 = scmp.ge.s32.totalorder %s1210_s11, 16  ;;  %p539_p13 = scmp.lt.s32.totalorder %s1210_s11, 16 }
  0x75   : > { %s502_s15 = sshll.u32 %s203_s14, 3  ;;  %s223_s17 = sadd.s32 16, %s1210_s11 }
  0x76   : > { %s515_s16 = scalar_select %p539_p13, [#allocation6], [#allocation45] }
  0x77   : > { %s516_s2 = scalar_select %p539_p13, %s1210_s11, 0 }
  0x78   : > { %s1221_s18 = scalar_lea.vmem [#allocation2], %s502_s15  ;;  %s1472_s17 = smov (!%p539_p13, %s223_s17), 0 }
  0x79   : > { %s205_s7 = sld [smem:[%s515_s16 + %s516_s2]]  ;;  %s219_s19 = sshll.u32 %s1221_s18, 4  ;;  %s1229_s19 = int_to_ptr.vmem [resolvable:$true] %s219_s19 }
  0x7a   : > { %s462_s20 = scalar_lea.vmem %s1221_s18, 1 [#allocation2]  ;;  %s241_s5 = sadd.s32 32, %s1210_s11 }
  0x7b   : > { %s518_s21 = scalar_select %p539_p13, [#allocation6], [#allocation46] }
  0x7c   : > { %s1236_s12 = sshll.u32 %s462_s20, 4  ;;  %s466_s8 = scalar_lea.vmem %s1221_s18, 2 [#allocation2]  ;;  %s238_s12 = int_to_ptr.vmem [resolvable:$true] %s1236_s12 }
  0x7d   : > { %s1231_s23 = sld [smem:[%s518_s21 + %s1472_s17]]  ;;  %s1243_s24 = scalar_lea.sflag [#allocation3], %s203_s14 }
  0x7f   : > { %s206_s0 = scalar_lea.hbm %s1466_s1, %s205_s7 }
  0x80   : > { %s1238_s29 = sshll.u32 %s206_s0, 4  ;;  %s218_s29 = int_to_ptr.hbm [resolvable:$true] %s1238_s29 }
  0x81   : > { %s795_s28 = sshra.s32 %s218_s29, 4  ;;  %s796_s28 = int_to_ptr.hbm [resolvable:$true] %s795_s28 }
  0x82   : > { %s797_s27 = scalar_lea.hbm %s796_s28, 1  ;;  %p802_p3 = scmp.lt.s32.totalorder %s796_s28, %s1466_s1 }
  0x83   : > { %p798_p0 = scmp.ne.s32.totalorder %s796_s28, %s797_s27  ;;  %p803_p4 = scmp.lt.s32.totalorder %s1129_s22, %s797_s27 }
  0x85   : > { %p799_p1 = pnand %p798_p0, %p539_p13  ;;  %p804_p5 = por %p803_p4, %p802_p3 }
  0x87   : > { %p800_p2 = pneg %p799_p1 }
  0x89   : > { %p805_p6 = pnand %p804_p5, %p800_p2 }
  0x8b   : > { %808 = shalt.err (!%p805_p6)  }
  0x8c   : > { %s809_s10 = sshra.s32 %s1229_s19, 4  ;;  %s1072_s14 = smov [#allocation2]   ;;  %s810_s10 = int_to_ptr.vmem [resolvable:$true] %s809_s10 }
  0x8d   : > { %s811_s13 = scalar_lea.vmem %s810_s10, 1  ;;  %s1254_s15 = scalar_lea.vmem %s1072_s14, 16 }
  0x8e   : > { %p812_p7 = scmp.ne.s32.totalorder %s810_s10, %s811_s13  ;;  %p816_p10 = scmp.lt.s32.totalorder %s810_s10, [#allocation2] }
  0x8f   : > { %p817_p11 = scmp.lt.s32.totalorder %s1254_s15, %s811_s13 }
  0x90   : > { %p813_p8 = pnand %p812_p7, %p539_p13 }
  0x91   : > { %p818_p0 = por %p817_p11, %p816_p10 }
  0x92   : > { %p814_p9 = pneg %p813_p8 }
  0x94   : > { %p819_p1 = pnand %p818_p0, %p814_p9 }
  0x96   : > { %822 = shalt.err (!%p819_p1)  }
  0x97   : > { %517 = dma.hbm_to_vmem [thread:$0]  (%p539_p13), %s218_s29, 16, %s1229_s19, %s1243_s24 }
  0x98   : > { %s1263_s16 = scalar_select %p539_p13, [#allocation6], [#allocation47] }
  0x99   : > { %s225_s17 = scalar_lea.hbm %s1466_s1, %s1231_s23  ;;  %s1272_s21 = sshll.u32 %s466_s8, 4  ;;  %s256_s21 = int_to_ptr.vmem [resolvable:$true] %s1272_s21 }
  0x9a   : > { %s235_s20 = sshll.u32 %s225_s17, 4  ;;  %s259_s6 = sadd.s32 48, %s1210_s11  ;;  %s236_s20 = int_to_ptr.hbm [resolvable:$true] %s235_s20 }
  0x9b   : > { %s823_s25 = sshra.s32 %s236_s20, 4  ;;  %s824_s25 = int_to_ptr.hbm [resolvable:$true] %s823_s25 }
  0x9c   : > { %s825_s0 = scalar_lea.hbm %s824_s25, 1  ;;  %p830_p5 = scmp.lt.s32.totalorder %s824_s25, %s1466_s1 }
  0x9d   : > { %p826_p2 = scmp.ne.s32.totalorder %s824_s25, %s825_s0  ;;  %p831_p6 = scmp.lt.s32.totalorder %s1129_s22, %s825_s0 }
  0x9f   : > { %p827_p3 = pnand %p826_p2, %p539_p13  ;;  %p832_p7 = por %p831_p6, %p830_p5 }
  0xa1   : > { %p828_p4 = pneg %p827_p3 }
  0xa3   : > { %p833_p8 = pnand %p832_p7, %p828_p4 }
  0xa5   : > { %836 = shalt.err (!%p833_p8)  }
  0xa6   : > { %s837_s23 = sshra.s32 %s238_s12, 4  ;;  %s838_s23 = int_to_ptr.vmem [resolvable:$true] %s837_s23 }
  0xa7   : > { %s839_s8 = scalar_lea.vmem %s838_s23, 1  ;;  %p844_p0 = scmp.lt.s32.totalorder %s838_s23, [#allocation2] }
  0xa8   : > { %p840_p9 = scmp.ne.s32.totalorder %s838_s23, %s839_s8  ;;  %p845_p1 = scmp.lt.s32.totalorder %s1254_s15, %s839_s8 }
  0xaa   : > { %p841_p10 = pnand %p840_p9, %p539_p13  ;;  %p846_p2 = por %p845_p1, %p844_p0 }
  0xac   : > { %p842_p11 = pneg %p841_p10 }
  0xae   : > { %p847_p3 = pnand %p846_p2, %p842_p11 }
  0xb0   : > { %850 = shalt.err (!%p847_p3)  }
  0xb1   : > { %520 = dma.hbm_to_vmem [thread:$0]  (%p539_p13), %s236_s20, 16, %s238_s12, %s1243_s24 }
  0xb2   : > { %s1474_s5 = smov (!%p539_p13, %s241_s5), 0  ;;  %s1476_s6 = smov (!%p539_p13, %s259_s6), 0 }
  0xb3   : > { %s524_s28 = scalar_select %p539_p13, [#allocation6], [#allocation48] }
  0xb4   : > { %s242_s27 = sld [smem:[%s1263_s16 + %s1474_s5]]  ;;  %s470_s9 = scalar_lea.vmem %s1221_s18, 3 [#allocation2] }
  0xb5   : > { %s277_s30 = sadd.s32 64, %s1210_s11  ;;  %s1299_s10 = sld [smem:[%s524_s28 + %s1476_s6]] }
  0xb6   : > { %s474_s13 = scalar_lea.vmem %s1221_s18, 4 [#allocation2]  ;;  %s1478_s30 = smov (!%p539_p13, %s277_s30), 0 }
  0xb7   : > { %s527_s14 = scalar_select %p539_p13, [#allocation6], [#allocation49] }
  0xb8   : > { %s1309_s17 = sshll.u32 %s470_s9, 4  ;;  %s1313_s20 = sshll.u32 %s474_s13, 4  ;;  %s274_s17 = int_to_ptr.vmem [resolvable:$true] %s1309_s17  ;;  %s292_s20 = int_to_ptr.vmem [resolvable:$true] %s1313_s20 }
  0xb9   : > { %s1311_s16 = sld [smem:[%s527_s14 + %s1478_s30]] }
  0xba   : > { %s243_s7 = scalar_lea.hbm %s1466_s1, %s242_s27 }
  0xbb   : > { %s253_s5 = sshll.u32 %s243_s7, 4  ;;  %s254_s5 = int_to_ptr.hbm [resolvable:$true] %s253_s5 }
  0xbc   : > { %s851_s6 = sshra.s32 %s254_s5, 4  ;;  %s852_s6 = int_to_ptr.hbm [resolvable:$true] %s851_s6 }
  0xbd   : > { %s853_s25 = scalar_lea.hbm %s852_s6, 1  ;;  %p858_p7 = scmp.lt.s32.totalorder %s852_s6, %s1466_s1 }
  0xbe   : > { %p854_p4 = scmp.ne.s32.totalorder %s852_s6, %s853_s25  ;;  %p859_p8 = scmp.lt.s32.totalorder %s1129_s22, %s853_s25 }
  0xc0   : > { %p855_p5 = pnand %p854_p4, %p539_p13  ;;  %p860_p9 = por %p859_p8, %p858_p7 }
  0xc2   : > { %p856_p6 = pneg %p855_p5 }
  0xc4   : > { %p861_p10 = pnand %p860_p9, %p856_p6 }
  0xc6   : > { %864 = shalt.err (!%p861_p10)  }
  0xc7   : > { %s865_s29 = sshra.s32 %s256_s21, 4  ;;  %s866_s29 = int_to_ptr.vmem [resolvable:$true] %s865_s29 }
  0xc8   : > { %s867_s23 = scalar_lea.vmem %s866_s29, 1  ;;  %p872_p2 = scmp.lt.s32.totalorder %s866_s29, [#allocation2] }
  0xc9   : > { %p868_p11 = scmp.ne.s32.totalorder %s866_s29, %s867_s23  ;;  %p873_p3 = scmp.lt.s32.totalorder %s1254_s15, %s867_s23 }
  0xcb   : > { %p869_p0 = pnand %p868_p11, %p539_p13  ;;  %p874_p4 = por %p873_p3, %p872_p2 }
  0xcd   : > { %p870_p1 = pneg %p869_p0 }
  0xcf   : > { %p875_p5 = pnand %p874_p4, %p870_p1 }
  0xd1   : > { %878 = shalt.err (!%p875_p5)  }
  0xd2   : > { %523 = dma.hbm_to_vmem [thread:$0]  (%p539_p13), %s254_s5, 16, %s256_s21, %s1243_s24 }
  0xd3   : > { %s261_s27 = scalar_lea.hbm %s1466_s1, %s1299_s10  ;;  %s478_s30 = scalar_lea.vmem %s1221_s18, 5 [#allocation2] }
  0xd4   : > { %s271_s9 = sshll.u32 %s261_s27, 4  ;;  %s272_s9 = int_to_ptr.hbm [resolvable:$true] %s271_s9 }
  0xd5   : > { %s879_s13 = sshra.s32 %s272_s9, 4  ;;  %s880_s13 = int_to_ptr.hbm [resolvable:$true] %s879_s13 }
  0xd6   : > { %s881_s14 = scalar_lea.hbm %s880_s13, 1  ;;  %p886_p9 = scmp.lt.s32.totalorder %s880_s13, %s1466_s1 }
  0xd7   : > { %p882_p6 = scmp.ne.s32.totalorder %s880_s13, %s881_s14  ;;  %p887_p10 = scmp.lt.s32.totalorder %s1129_s22, %s881_s14 }
  0xd9   : > { %p883_p7 = pnand %p882_p6, %p539_p13  ;;  %p888_p11 = por %p887_p10, %p886_p9 }
  0xdb   : > { %p884_p8 = pneg %p883_p7 }
  0xdd   : > { %p889_p0 = pnand %p888_p11, %p884_p8 }
  0xdf   : > { %892 = shalt.err (!%p889_p0)  }
  0xe0   : > { %s893_s21 = sshra.s32 %s274_s17, 4  ;;  %s894_s21 = int_to_ptr.vmem [resolvable:$true] %s893_s21 }
  0xe1   : > { %s895_s10 = scalar_lea.vmem %s894_s21, 1  ;;  %p900_p4 = scmp.lt.s32.totalorder %s894_s21, [#allocation2] }
  0xe2   : > { %p896_p1 = scmp.ne.s32.totalorder %s894_s21, %s895_s10  ;;  %p901_p5 = scmp.lt.s32.totalorder %s1254_s15, %s895_s10 }
  0xe4   : > { %p897_p2 = pnand %p896_p1, %p539_p13  ;;  %p902_p6 = por %p901_p5, %p900_p4 }
  0xe6   : > { %p898_p3 = pneg %p897_p2 }
  0xe8   : > { %p903_p7 = pnand %p902_p6, %p898_p3 }
  0xea   : > { %906 = shalt.err (!%p903_p7)  }
  0xeb   : > { %526 = dma.hbm_to_vmem [thread:$0]  (%p539_p13), %s272_s9, 16, %s274_s17, %s1243_s24 }
  0xec   : > { %s279_s6 = scalar_lea.hbm %s1466_s1, %s1311_s16  ;;  %s295_s25 = sadd.s32 80, %s1210_s11 }
  0xed   : > { %s289_s0 = sshll.u32 %s279_s6, 4  ;;  %s1355_s19 = sshll.u32 %s478_s30, 4  ;;  %s290_s0 = int_to_ptr.hbm [resolvable:$true] %s289_s0  ;;  %s310_s19 = int_to_ptr.vmem [resolvable:$true] %s1355_s19 }
  0xee   : > { %s313_s29 = sadd.s32 96, %s1210_s11  ;;  %s907_s23 = sshra.s32 %s290_s0, 4  ;;  %s908_s23 = int_to_ptr.hbm [resolvable:$true] %s907_s23 }
  0xef   : > { %s909_s8 = scalar_lea.hbm %s908_s23, 1  ;;  %p914_p11 = scmp.lt.s32.totalorder %s908_s23, %s1466_s1 }
  0xf0   : > { %p910_p8 = scmp.ne.s32.totalorder %s908_s23, %s909_s8  ;;  %p915_p0 = scmp.lt.s32.totalorder %s1129_s22, %s909_s8 }
  0xf2   : > { %p911_p9 = pnand %p910_p8, %p539_p13  ;;  %p916_p1 = por %p915_p0, %p914_p11 }
  0xf4   : > { %p912_p10 = pneg %p911_p9 }
  0xf6   : > { %p917_p2 = pnand %p916_p1, %p912_p10 }
  0xf8   : > { %920 = shalt.err (!%p917_p2)  }
  0xf9   : > { %s921_s17 = sshra.s32 %s292_s20, 4  ;;  %s922_s17 = int_to_ptr.vmem [resolvable:$true] %s921_s17 }
  0xfa   : > { %s923_s16 = scalar_lea.vmem %s922_s17, 1  ;;  %p928_p6 = scmp.lt.s32.totalorder %s922_s17, [#allocation2] }
  0xfb   : > { %p924_p3 = scmp.ne.s32.totalorder %s922_s17, %s923_s16  ;;  %p929_p7 = scmp.lt.s32.totalorder %s1254_s15, %s923_s16 }
  0xfd   : > { %p925_p4 = pnand %p924_p3, %p539_p13  ;;  %p930_p8 = por %p929_p7, %p928_p6 }
  0xff   : > { %p926_p5 = pneg %p925_p4 }
 0x101   : > { %p931_p9 = pnand %p930_p8, %p926_p5 }
 0x103   : > { %934 = shalt.err (!%p931_p9)  }
 0x104   : > { %529 = dma.hbm_to_vmem [thread:$0]  (%p539_p13), %s290_s0, 16, %s292_s20, %s1243_s24 }
 0x105   : > { %s530_s9 = scalar_select %p539_p13, [#allocation6], [#allocation50] }
 0x106   : > { %s1480_s25 = smov (!%p539_p13, %s295_s25), 0  ;;  %s1482_s29 = smov (!%p539_p13, %s313_s29), 0 }
 0x107   : > { %s533_s30 = scalar_select %p539_p13, [#allocation6], [#allocation51] }
 0x108   : > { %s296_s13 = sld [smem:[%s530_s9 + %s1480_s25]]  ;;  %s331_s14 = sadd.s32 112, %s1210_s11 }
 0x109   : > { %s1386_s12 = sld [smem:[%s533_s30 + %s1482_s29]]  ;;  %s482_s2 = scalar_lea.vmem %s1221_s18, 6 [#allocation2] }
 0x10a   : > { %s536_s20 = scalar_select %p539_p13, [#allocation6], [#allocation52] }
 0x10b   : > { %s1484_s14 = smov (!%p539_p13, %s331_s14), 0  ;;  %s1396_s5 = sshll.u32 %s482_s2, 4  ;;  %s328_s5 = int_to_ptr.vmem [resolvable:$true] %s1396_s5 }
 0x10c   : > { %s1398_s25 = sld [smem:[%s536_s20 + %s1484_s14]]  ;;  %s486_s0 = scalar_lea.vmem %s1221_s18, 7 [#allocation2] }
 0x10e   : > { %s297_s7 = scalar_lea.hbm %s1466_s1, %s296_s13 }
 0x10f   : > { %s307_s6 = sshll.u32 %s297_s7, 4  ;;  %s308_s6 = int_to_ptr.hbm [resolvable:$true] %s307_s6 }
 0x110   : > { %s935_s23 = sshra.s32 %s308_s6, 4  ;;  %s936_s23 = int_to_ptr.hbm [resolvable:$true] %s935_s23 }
 0x111   : > { %s937_s29 = scalar_lea.hbm %s936_s23, 1  ;;  %p942_p1 = scmp.lt.s32.totalorder %s936_s23, %s1466_s1 }
 0x112   : > { %p938_p10 = scmp.ne.s32.totalorder %s936_s23, %s937_s29  ;;  %p943_p2 = scmp.lt.s32.totalorder %s1129_s22, %s937_s29 }
 0x114   : > { %p939_p11 = pnand %p938_p10, %p539_p13  ;;  %p944_p3 = por %p943_p2, %p942_p1 }
 0x116   : > { %p940_p0 = pneg %p939_p11 }
 0x118   : > { %p945_p4 = pnand %p944_p3, %p940_p0 }
 0x11a   : > { %948 = shalt.err (!%p945_p4)  }
 0x11b   : > { %s949_s18 = sshra.s32 %s310_s19, 4  ;;  %s950_s18 = int_to_ptr.vmem [resolvable:$true] %s949_s18 }
 0x11c   : > { %s951_s27 = scalar_lea.vmem %s950_s18, 1  ;;  %p956_p8 = scmp.lt.s32.totalorder %s950_s18, [#allocation2] }
 0x11d   : > { %p952_p5 = scmp.ne.s32.totalorder %s950_s18, %s951_s27  ;;  %p957_p9 = scmp.lt.s32.totalorder %s1254_s15, %s951_s27 }
 0x11f   : > { %p953_p6 = pnand %p952_p5, %p539_p13  ;;  %p958_p10 = por %p957_p9, %p956_p8 }
 0x121   : > { %p954_p7 = pneg %p953_p6 }
 0x123   : > { %p959_p11 = pnand %p958_p10, %p954_p7 }
 0x125   : > { %962 = shalt.err (!%p959_p11)  }
 0x126   : > { %532 = dma.hbm_to_vmem [thread:$0]  (%p539_p13), %s308_s6, 16, %s310_s19, %s1243_s24 }
 0x127   : > { %s315_s9 = scalar_lea.hbm %s1466_s1, %s1386_s12  ;;  %s1422_s13 = sshll.u32 %s486_s0, 4  ;;  %s346_s13 = int_to_ptr.vmem [resolvable:$true] %s1422_s13 }
 0x128   : > { %s325_s30 = sshll.u32 %s315_s9, 4  ;;  %s326_s30 = int_to_ptr.hbm [resolvable:$true] %s325_s30 }
 0x129   : > { %s963_s14 = sshra.s32 %s326_s30, 4  ;;  %s964_s14 = int_to_ptr.hbm [resolvable:$true] %s963_s14 }
 0x12a   : > { %s965_s2 = scalar_lea.hbm %s964_s14, 1  ;;  %p970_p3 = scmp.lt.s32.totalorder %s964_s14, %s1466_s1 }
 0x12b   : > { %p966_p0 = scmp.ne.s32.totalorder %s964_s14, %s965_s2  ;;  %p971_p4 = scmp.lt.s32.totalorder %s1129_s22, %s965_s2 }
 0x12d   : > { %p967_p1 = pnand %p966_p0, %p539_p13  ;;  %p972_p5 = por %p971_p4, %p970_p3 }
 0x12f   : > { %p968_p2 = pneg %p967_p1 }
 0x131   : > { %p973_p6 = pnand %p972_p5, %p968_p2 }
 0x133   : > { %976 = shalt.err (!%p973_p6)  }
 0x134   : > { %s977_s19 = sshra.s32 %s328_s5, 4  ;;  %s978_s19 = int_to_ptr.vmem [resolvable:$true] %s977_s19 }
 0x135   : > { %s979_s12 = scalar_lea.vmem %s978_s19, 1  ;;  %p984_p10 = scmp.lt.s32.totalorder %s978_s19, [#allocation2] }
 0x136   : > { %p980_p7 = scmp.ne.s32.totalorder %s978_s19, %s979_s12  ;;  %p985_p11 = scmp.lt.s32.totalorder %s1254_s15, %s979_s12 }
 0x138   : > { %p981_p8 = pnand %p980_p7, %p539_p13  ;;  %p986_p0 = por %p985_p11, %p984_p10 }
 0x13a   : > { %p982_p9 = pneg %p981_p8 }
 0x13c   : > { %p987_p1 = pnand %p986_p0, %p982_p9 }
 0x13e   : > { %990 = shalt.err (!%p987_p1)  }
 0x13f   : > { %535 = dma.hbm_to_vmem [thread:$0]  (%p539_p13), %s326_s30, 16, %s328_s5, %s1243_s24 }
 0x140   : > { %s333_s6 = scalar_lea.hbm %s1466_s1, %s1398_s25 }
 0x141   : > { %s343_s0 = sshll.u32 %s333_s6, 4  ;;  %s344_s0 = int_to_ptr.hbm [resolvable:$true] %s343_s0 }
 0x142   : > { %s991_s23 = sshra.s32 %s344_s0, 4  ;;  %s992_s23 = int_to_ptr.hbm [resolvable:$true] %s991_s23 }
 0x143   : > { %s993_s29 = scalar_lea.hbm %s992_s23, 1  ;;  %p998_p5 = scmp.lt.s32.totalorder %s992_s23, %s1466_s1 }
 0x144   : > { %p994_p2 = scmp.ne.s32.totalorder %s992_s23, %s993_s29  ;;  %p999_p6 = scmp.lt.s32.totalorder %s1129_s22, %s993_s29 }
 0x146   : > { %p995_p3 = pnand %p994_p2, %p539_p13  ;;  %p1000_p7 = por %p999_p6, %p998_p5 }
 0x148   : > { %p996_p4 = pneg %p995_p3 }
 0x14a   : > { %p1001_p8 = pnand %p1000_p7, %p996_p4 }
 0x14c   : > { %1004 = shalt.err (!%p1001_p8)  }
 0x14d   : > { %s1005_s5 = sshra.s32 %s346_s13, 4  ;;  %s1006_s5 = int_to_ptr.vmem [resolvable:$true] %s1005_s5 }
 0x14e   : > { %s1007_s25 = scalar_lea.vmem %s1006_s5, 1  ;;  %p1012_p0 = scmp.lt.s32.totalorder %s1006_s5, [#allocation2] }
 0x14f   : > { %p1008_p9 = scmp.ne.s32.totalorder %s1006_s5, %s1007_s25  ;;  %p1013_p1 = scmp.lt.s32.totalorder %s1254_s15, %s1007_s25 }
 0x151   : > { %p1009_p10 = pnand %p1008_p9, %p539_p13  ;;  %p1014_p2 = por %p1013_p1, %p1012_p0 }
 0x153   : > { %p1010_p11 = pneg %p1009_p10 }
 0x155   : > { %p1015_p3 = pnand %p1014_p2, %p1010_p11 }
 0x157   : > { %1018 = shalt.err (!%p1015_p3)  }
 0x158   : > { %538 = dma.hbm_to_vmem [thread:$0]  (%p539_p13), %s344_s0, 16, %s346_s13, %s1243_s24  ;;  %v349_v1 = vld [vmem:[#allocation4] sm:$0xff]  ;;  %v370_v5 = vld [vmem:[#allocation7 + $0x70] sm:$0xff] (%p501_p12)  ;;  %v369_v6 = vld [vmem:[#allocation7 + $0x68] sm:$0xff] (%p501_p12) }
 0x159   : > { %s510_s18 = sshll.u32 %s1207_s26, 3  ;;  %v371_v4 = vld [vmem:[#allocation7 + $0x78] sm:$0xff] (%p501_p12)  ;;  %v368_v7 = vld [vmem:[#allocation7 + $0x60] sm:$0xff] (%p501_p12)  ;;  %v366_v9 = vld [vmem:[#allocation7 + $0x50] sm:$0xff] (%p501_p12)  ;;  %s1073_s11 = smov (%p501_p12), [#allocation10]  }
 0x15a   : > { %s351_s27 = scalar_lea.vmem [#allocation2], %s510_s18  ;;  %178 = sbr.rel (!%p501_p12) target bundleno = 112 (0x70), region = 142  ;;  %376 = vmatpush.msra.mxu0 (%p501_p12), %v371_v4  ;;  %v367_v8 = vld [vmem:[#allocation7 + $0x58] sm:$0xff] (%p501_p12)  ;;  %v365_v10 = vld [vmem:[#allocation7 + $0x48] sm:$0xff] (%p501_p12)  ;;  %v364_v11 = vld [vmem:[#allocation7 + $0x40] sm:$0xff] (%p501_p12) }
 0x15b   : > { %v352_v2 = vld [vmem:[%s351_s27] sm:$0xff]  ;;  %v363_v12 = vld [vmem:[#allocation7 + $0x38] sm:$0xff] (%p501_p12)  ;;  %v360_v15 = vld [vmem:[#allocation7 + $0x20] sm:$0xff] (%p501_p12)  ;;  %s421_s26 = sshll.u32 (%p501_p12), %s1073_s11, 4  ;;  %s422_s26 = int_to_ptr.vmem [resolvable:$true] %s421_s26 }
 0x15c   : > { %v353_v3 = vmax.f32 %v349_v1, %v352_v2  ;;  %377 = vmatpush.msra.mxu0 (%p501_p12), %v370_v5  ;;  %v362_v13 = vld [vmem:[#allocation7 + $0x30] sm:$0xff] (%p501_p12)  ;;  %v361_v14 = vld [vmem:[#allocation7 + $0x28] sm:$0xff] (%p501_p12)  ;;  %v359_v16 = vld [vmem:[#allocation7 + $0x18] sm:$0xff] (%p501_p12) }
 0x15d   :  { %v358_v17 = vld [vmem:[#allocation7 + $0x10] sm:$0xff] (%p501_p12)  ;;  %v357_v18 = vld [vmem:[#allocation7 + $0x8] sm:$0xff] (%p501_p12)  ;;  %v356_v19 = vld [vmem:[#allocation7] sm:$0xff] (%p501_p12) }
 0x15e   : > { %354 = vst [vmem:[#allocation4] sm:$0xff] %v353_v3  ;;  %378 = vmatpush.msra.mxu0 (%p501_p12), %v369_v6  ;;  %v562_v21 = vld [vmem:[%s1468_s3] ss:$0 sm:$0xff] (%p501_p12)  ;;  %s423_s3 = sshll.u32 (%p501_p12), %s1469_s4, 4  ;;  %s424_s3 = int_to_ptr.hbm [resolvable:$true] %s423_s3 }
 0x160   :  { %379 = vmatpush.msra.mxu0 %v368_v7 }
 0x162   :  { %380 = vmatpush.msra.mxu0 %v367_v8 }
 0x164   :  { %381 = vmatpush.msra.mxu0 %v366_v9 }
 0x165   :  { %v355_v20 = vld [vmem:[#allocation4] sm:$0xff] }
 0x166   :  { %382 = vmatpush.msra.mxu0 %v365_v10 }
 0x168   :  { %383 = vmatpush.msra.mxu0 %v364_v11 }
 0x16a   :  { %384 = vmatpush.msra.mxu0 %v363_v12 }
 0x16c   :  { %385 = vmatpush.msra.mxu0 %v362_v13 }
 0x16e   :  { %386 = vmatpush.msra.mxu0 %v361_v14 }
 0x170   :  { %387 = vmatpush.msra.mxu0 %v360_v15 }
 0x172   :  { %388 = vmatpush.msra.mxu0 %v359_v16 }
 0x174   :  { %389 = vmatpush.msra.mxu0 %v358_v17 }
 0x176   :  { %390 = vmatpush.msra.mxu0 %v357_v18 }
 0x178   :  { %391 = vmatpush.msra.mxu0 %v356_v19 }
 0x179   :  { %392 = vmatmul.f32.vlgmr.msra.gmra.mxu0 %v355_v20 }
 0x1f6   :  { %v393_v22 = vpop.f32.mrf.mxu0 }
 0x1f7   :  { %v394_v23 = vadd.f32 %v562_v21, %v393_v22 }
 0x1f9   :  { %v511_v24 = vmul.f32 -1.442695, %v394_v23 }
 0x1fb   :  { %563 = vpow2.f32 %v511_v24 }
 0x201   :  { %v564_v25 = vpop.eup %563 }
 0x202   :  { %v399_v26 = vadd.f32 1.0, %v564_v25 }
 0x204   :  { %565 = vrcp.f32 %v399_v26  ;;  %v411_v30 = vand.u32 2147483648, %v399_v26  ;;  %v409_v32 = vand.u32 2147483647, %v399_v26  ;;  %vm405_vm1 = vweird.f32 %v399_v26 }
 0x206   :  { %v412_v34 = vor.u32 1.1754944e-38, %v411_v30  ;;  %vm410_vm3 = vcmp.eq.f32.partialorder %v409_v32, 8.507059e+37 }
 0x20a   :  { %v566_v27 = vpop.eup %565 }
 0x20b   :  { %v401_v28 = vmul.f32 %v566_v27, %v399_v26  ;;  %vm406_vm0 = vweird.f32 %v566_v27 }
 0x20c   :  { %vm407_vm2 = vmor %vm405_vm1, %vm406_vm0 }
 0x20d   :  { %v402_v29 = vsub.f32 1.0, %v401_v28 }
 0x20f   :  { %v403_v31 = vmul.f32 %v566_v27, %v402_v29 }
 0x211   :  { %v404_v33 = vadd.f32 %v566_v27, %v403_v31 }
 0x213   :  { %v408_v35 = vsel %vm407_vm2, %v566_v27, %v404_v33 }
 0x214   :  { %v413_v36 = vsel %vm410_vm3, %v412_v34, %v408_v35 }
 0x215   :  { %415 = vst [vmem:[#allocation10] sm:$0xff] %v413_v36 }
 0x216   :  { %426 = dma.vmem_to_hbm [thread:$0]  %s422_s26, 128, %s424_s3, [#allocation9]  }
 0x217   :  { %1053 = dma.done.wait [#allocation9], 128  }
 0x218   :  { %1054 = vsyncadd [#allocation9], 4294967168 }
 0x219   :  { %431 = vsyncpa [#allocation8], 1 }
 0x21a   :  { %432 = vsyncpa [#allocation9], 1 }
 0x21b   :  { %433 = vsyncmov [#allocation3] }
 0x21e   :  { %s434_s16 = vpop.sfrf %433 }
 0x21f   :  { %p512_p12 = scmp.ne.s32.totalorder %s434_s16, 0 }
 0x221   :  { %438 = shalt.err (%p512_p12)  }
 0x222   :  { %440 = vsyncmov [#allocation3 + $0x1] }
 0x225   :  { %s441_s4 = vpop.sfrf %440 }
 0x226   :  { %p513_p13 = scmp.ne.s32.totalorder %s441_s4, 0 }
 0x228   :  { %445 = shalt.err (%p513_p13)  }

</bundles_post_ra>
